<compile_context>
chip_gen: v5e
topology: v5e:2x2
jax: 0.10.0
libtpu: 0.0.40
codegen_flags: <defaults>
</compile_context>

<pallas_src>
import math

import jax
import jax.numpy as jnp
from jax import lax
from jax.experimental import pallas as pl
from jax.experimental.pallas import tpu as pltpu

GIBBS_STEPS = 20
REG_FACTOR = 0.2
EPS = 1e-6


def _sigmoid(x):
    # sigmoid(x) == 0.5 * tanh(x/2) + 0.5 : one EUP op instead of exp + divide.
    return 0.5 * jnp.tanh(0.5 * x) + 0.5


def _sum_all(x):
    # full 2-D reduce as lane-reduce then sublane-reduce, keeps (1, 1) shape.
    return jnp.sum(jnp.sum(x, axis=1, keepdims=True), axis=0, keepdims=True)


def rnnrbm_kernel(vis_ref, w_ref, wuhT_ref, wuvT_ref, wvuT_ref, wuuT_ref,
                  bh_ref, bv_ref, bu_ref, u0_ref, rand_h_ref, rand_v_ref,
                  cost_ref, mse_ref, reg_ref,
                  vp_scr, u_scr):
    T = vis_ref.shape[0]
    nsteps = T - 1

    # ---------------- Phase 1: RNN hidden states (tiny, sequential) ---------
    # vp[t] = Wvu v_t + bu for ALL t in one batched matmul (data only).
    vp_scr[...] = (jnp.dot(vis_ref[...], wvuT_ref[...],
                           preferred_element_type=jnp.float32) + bu_ref[...])

    # u_scr[i] holds u_{t-1} used at timestep t = i+1 ; row 0 is the u0 param.
    u_scr[pl.ds(0, 1), :] = u0_ref[...]

    def rnn_body(i, u_prev):
        u_new = jnp.tanh(vp_scr[pl.ds(i, 1), :]
                         + jnp.dot(u_prev, wuuT_ref[...],
                                   preferred_element_type=jnp.float32))
        u_scr[pl.ds(i, 1), :] = u_new
        return u_new

    lax.fori_loop(1, nsteps, rnn_body, u0_ref[...])

    # ---------------- Phase 2: batched over timesteps t = 1 .. T-1 ----------
    U = u_scr[...]                                                 # (T-1, R)
    BH = jnp.dot(U, wuhT_ref[...],
                 preferred_element_type=jnp.float32) + bh_ref[...]  # (T-1, H)
    BV = jnp.dot(U, wuvT_ref[...],
                 preferred_element_type=jnp.float32) + bv_ref[...]  # (T-1, V)
    Vdata = vis_ref[pl.ds(1, nsteps), :]                            # (T-1, V)

    # 20-step block Gibbs chain, batched over all timesteps.  A single copy of
    # w serves both directions: v @ w^T via dot_general, h @ w via jnp.dot.
    v_ = Vdata
    for g in range(GIBBS_STEPS):
        ph_logit = lax.dot_general(
            v_, w_ref[...],
            dimension_numbers=(((1,), (1,)), ((), ())),
            preferred_element_type=jnp.float32) + BH                # (T-1, H)
        h_ = jnp.where(_sigmoid(ph_logit) > rand_h_ref[g], 1.0, 0.0)
        pv_logit = jnp.dot(h_, w_ref[...],
                           preferred_element_type=jnp.float32) + BV  # (T-1, V)
        v_ = jnp.where(_sigmoid(pv_logit) > rand_v_ref[g], 1.0, 0.0)
    neg = v_

    # Cross-entropy of visible[t] against sigmoid(bv_t), summed over all t, V.
    y = _sigmoid(BV)
    ce_elem = (-Vdata * jnp.log(EPS + y)
               - (1.0 - Vdata) * jnp.log(EPS + 1.0 - y))            # (T-1, V)
    ce_sum = _sum_all(ce_elem)                                      # (1, 1)

    # Regularizer 0.2 * (||wuv||_F + ||wuh||_F); Frobenius norm is
    # transpose-invariant so the transposed copies give the same value.
    reg = REG_FACTOR * (jnp.sqrt(_sum_all(wuvT_ref[...] ** 2))
                        + jnp.sqrt(_sum_all(wuhT_ref[...] ** 2)))   # (1, 1)

    cost_ref[...] = ce_sum * (1.0 / float(T)) + reg     # matches torch: /T then +reg
    reg_ref[...] = reg
    # per-timestep mean |v_t - negative_sample| : one lane-reduce, one store.
    mse_ref[...] = jnp.mean(jnp.abs(Vdata - neg), axis=1, keepdims=True)

    # TODO(synk): the training=True branch (free-energy contrastive loss,
    # autograd backward + SGD step) is training-time logic with no clean
    # forward-kernel equivalent and is intentionally not implemented.


def rnnrbm_forward(visible, params, seed=0):
    visible = jnp.asarray(visible, jnp.float32)
    T, V = visible.shape
    w = jnp.asarray(params["w"], jnp.float32)            # (H, V) - single copy
    H = w.shape[0]
    wuu = jnp.asarray(params["wuu"], jnp.float32)        # (R, R)
    R = wuu.shape[0]
    nsteps = T - 1

    inputs = (
        visible,                                          # (T, V)
        w,                                                # (H, V)
        jnp.asarray(params["wuh"], jnp.float32).T,        # (R, H)
        jnp.asarray(params["wuv"], jnp.float32).T,        # (R, V)
        jnp.asarray(params["wvu"], jnp.float32).T,        # (V, R)
        wuu.T,                                            # (R, R)
        jnp.asarray(params["bh"], jnp.float32).reshape(1, H),
        jnp.asarray(params["bv"], jnp.float32).reshape(1, V),
        jnp.asarray(params["bu"], jnp.float32).reshape(1, R),
        jnp.asarray(params["u0"], jnp.float32).reshape(1, R),
    )

    # torch.rand -> host-side jax.random; one batched draw for the whole
    # kernel (stream differs from PyTorch, Bernoulli-sampling semantics match).
    kh, kv = jax.random.split(jax.random.PRNGKey(seed))
    rand_h = jax.random.uniform(kh, (GIBBS_STEPS, nsteps, H), jnp.float32)
    rand_v = jax.random.uniform(kv, (GIBBS_STEPS, nsteps, V), jnp.float32)

    out_shape = (jax.ShapeDtypeStruct((1, 1), jnp.float32),        # total_cost
                 jax.ShapeDtypeStruct((nsteps, 1), jnp.float32),   # mse per step
                 jax.ShapeDtypeStruct((1, 1), jnp.float32))        # reg_term

    total_cost, mse, reg = pl.pallas_call(
        rnnrbm_kernel,
        out_shape=out_shape,
        scratch_shapes=[pltpu.VMEM((T, R), jnp.float32),      # vp = Wvu v_t + bu
                        pltpu.VMEM((nsteps, R), jnp.float32)],  # U rows (u_{t-1})
    )(*inputs, rand_h, rand_v)

    return total_cost[0, 0], mse[:, 0], reg[0, 0]


if __name__ == "__main__":
    # small shapes consistent with the module's forward:
    # visible: (T, visible_dim); RBM hidden H; RNN hidden R
    V, H, R, T = 16, 32, 32, 8
    scale = 1.0 / math.sqrt(H)

    key = jax.random.PRNGKey(0)
    ks = jax.random.split(key, 6)
    params = {
        "w":   jax.random.normal(ks[0], (H, V), jnp.float32) * scale,
        "wuu": jax.random.normal(ks[1], (R, R), jnp.float32) * scale,
        "wuv": jax.random.normal(ks[2], (V, R), jnp.float32) * scale,
        "wuh": jax.random.normal(ks[3], (H, R), jnp.float32) * scale,
        "wvu": jax.random.normal(ks[4], (R, V), jnp.float32) * scale,
        "bv":  jnp.zeros((V,), jnp.float32),
        "bh":  jnp.zeros((H,), jnp.float32),
        "bu":  jnp.zeros((R,), jnp.float32),
        "u0":  jnp.zeros((R,), jnp.float32),
    }
    visible = jax.random.bernoulli(ks[5], 0.5, (T, V)).astype(jnp.float32)

    total_cost, mse, reg = rnnrbm_forward(visible, params, seed=0)
    jax.block_until_ready((total_cost, mse, reg))
    print("KERNEL_OK")
</pallas_src>

<mosaic_0001>
module attributes {stable_mosaic.version = 11 : i64} {
  func.func @rnnrbm_kernel(%arg0: memref<8x16xf32, #tpu.memory_space<vmem>>, %arg1: memref<32x16xf32, #tpu.memory_space<vmem>>, %arg2: memref<32x32xf32, #tpu.memory_space<vmem>>, %arg3: memref<32x16xf32, #tpu.memory_space<vmem>>, %arg4: memref<16x32xf32, #tpu.memory_space<vmem>>, %arg5: memref<32x32xf32, #tpu.memory_space<vmem>>, %arg6: memref<1x32xf32, #tpu.memory_space<vmem>>, %arg7: memref<1x16xf32, #tpu.memory_space<vmem>>, %arg8: memref<1x32xf32, #tpu.memory_space<vmem>>, %arg9: memref<1x32xf32, #tpu.memory_space<vmem>>, %arg10: memref<20x7x32xf32, #tpu.memory_space<vmem>>, %arg11: memref<20x7x16xf32, #tpu.memory_space<vmem>>, %arg12: memref<1x1xf32, #tpu.memory_space<vmem>>, %arg13: memref<7x1xf32, #tpu.memory_space<vmem>>, %arg14: memref<1x1xf32, #tpu.memory_space<vmem>>, %arg15: memref<8x32xf32, #tpu.memory_space<vmem>>, %arg16: memref<7x32xf32, #tpu.memory_space<vmem>>) attributes {dimension_semantics = [], scalar_prefetch = 0 : i64, scratch_operands = 2 : i64, tpu.core_type = #tpu.core_type<tc>} {
    %c0 = arith.constant 0 : index
    %c0_0 = arith.constant 0 : index
    %0 = vector.load %arg0[%c0, %c0_0] : memref<8x16xf32, #tpu.memory_space<vmem>>, vector<8x16xf32>
    %c0_1 = arith.constant 0 : index
    %c0_2 = arith.constant 0 : index
    %1 = vector.load %arg4[%c0_1, %c0_2] : memref<16x32xf32, #tpu.memory_space<vmem>>, vector<16x32xf32>
    %cst = arith.constant dense<0.000000e+00> : vector<8x32xf32>
    %2 = tpu.matmul %0, %1, %cst {dimension_numbers = #tpu.dot_dimension_numbers<[1], [0], [0], [1], [0, 0, 1, 1], [], []>} : vector<8x16xf32>, vector<16x32xf32>, vector<8x32xf32> -> vector<8x32xf32>
    %c0_3 = arith.constant 0 : index
    %c0_4 = arith.constant 0 : index
    %3 = vector.load %arg8[%c0_3, %c0_4] : memref<1x32xf32, #tpu.memory_space<vmem>>, vector<1x32xf32>
    %4 = vector.broadcast %3 : vector<1x32xf32> to vector<8x32xf32>
    %5 = arith.addf %2, %4 : vector<8x32xf32>
    %c0_5 = arith.constant 0 : index
    %c0_6 = arith.constant 0 : index
    %6 = vector.load %arg15[%c0_5, %c0_6] : memref<8x32xf32, #tpu.memory_space<vmem>>, vector<8x32xf32>
    tpu.vector_store %arg15[%c0_5, %c0_6], %5 {strides = array<i32>} : memref<8x32xf32, #tpu.memory_space<vmem>>, vector<8x32xf32>,
    %c0_7 = arith.constant 0 : index
    %c0_8 = arith.constant 0 : index
    %7 = vector.load %arg9[%c0_7, %c0_8] : memref<1x32xf32, #tpu.memory_space<vmem>>, vector<1x32xf32>
    %c0_9 = arith.constant 0 : index
    %c0_10 = arith.constant 0 : index
    %8 = vector.load %arg16[%c0_9, %c0_10] : memref<7x32xf32, #tpu.memory_space<vmem>>, vector<1x32xf32>
    tpu.vector_store %arg16[%c0_9, %c0_10], %7 {strides = array<i32>} : memref<7x32xf32, #tpu.memory_space<vmem>>, vector<1x32xf32>,
    %c0_11 = arith.constant 0 : index
    %c0_12 = arith.constant 0 : index
    %9 = vector.load %arg9[%c0_11, %c0_12] : memref<1x32xf32, #tpu.memory_space<vmem>>, vector<1x32xf32>
    %c1_i32 = arith.constant 1 : i32
    %c6_i32 = arith.constant 6 : i32
    %10 = arith.addi %c1_i32, %c6_i32 : i32
    %c1_i32_13 = arith.constant 1 : i32
    %11 = scf.for %arg17 = %c1_i32 to %10 step %c1_i32_13 iter_args(%arg18 = %9) -> (vector<1x32xf32>)  : i32 {
      %717 = arith.index_cast %arg17 : i32 to index
      %c0_477 = arith.constant 0 : index
      %718 = vector.load %arg15[%717, %c0_477] : memref<8x32xf32, #tpu.memory_space<vmem>>, vector<1x32xf32>
      %c0_478 = arith.constant 0 : index
      %c0_479 = arith.constant 0 : index
      %719 = vector.load %arg5[%c0_478, %c0_479] : memref<32x32xf32, #tpu.memory_space<vmem>>, vector<32x32xf32>
      %cst_480 = arith.constant dense<0.000000e+00> : vector<1x32xf32>
      %720 = tpu.matmul %arg18, %719, %cst_480 {dimension_numbers = #tpu.dot_dimension_numbers<[1], [0], [0], [1], [0, 0, 1, 1], [], []>} : vector<1x32xf32>, vector<32x32xf32>, vector<1x32xf32> -> vector<1x32xf32>
      %721 = arith.addf %718, %720 : vector<1x32xf32>
      %722 = math.tanh %721 : vector<1x32xf32>
      %723 = arith.index_cast %arg17 : i32 to index
      %c0_481 = arith.constant 0 : index
      %724 = vector.load %arg16[%723, %c0_481] : memref<7x32xf32, #tpu.memory_space<vmem>>, vector<1x32xf32>
      tpu.vector_store %arg16[%723, %c0_481], %722 {strides = array<i32>} : memref<7x32xf32, #tpu.memory_space<vmem>>, vector<1x32xf32>,
      scf.yield %722 : vector<1x32xf32>
    }
    %c6_i32_14 = arith.constant 6 : i32
    %c0_15 = arith.constant 0 : index
    %c0_16 = arith.constant 0 : index
    %12 = vector.load %arg16[%c0_15, %c0_16] : memref<7x32xf32, #tpu.memory_space<vmem>>, vector<7x32xf32>
    %c0_17 = arith.constant 0 : index
    %c0_18 = arith.constant 0 : index
    %13 = vector.load %arg2[%c0_17, %c0_18] : memref<32x32xf32, #tpu.memory_space<vmem>>, vector<32x32xf32>
    %cst_19 = arith.constant dense<0.000000e+00> : vector<7x32xf32>
    %14 = tpu.matmul %12, %13, %cst_19 {dimension_numbers = #tpu.dot_dimension_numbers<[1], [0], [0], [1], [0, 0, 1, 1], [], []>} : vector<7x32xf32>, vector<32x32xf32>, vector<7x32xf32> -> vector<7x32xf32>
    %c0_20 = arith.constant 0 : index
    %c0_21 = arith.constant 0 : index
    %15 = vector.load %arg6[%c0_20, %c0_21] : memref<1x32xf32, #tpu.memory_space<vmem>>, vector<1x32xf32>
    %16 = vector.broadcast %15 : vector<1x32xf32> to vector<7x32xf32>
    %17 = arith.addf %14, %16 : vector<7x32xf32>
    %c0_22 = arith.constant 0 : index
    %c0_23 = arith.constant 0 : index
    %18 = vector.load %arg3[%c0_22, %c0_23] : memref<32x16xf32, #tpu.memory_space<vmem>>, vector<32x16xf32>
    %cst_24 = arith.constant dense<0.000000e+00> : vector<7x16xf32>
    %19 = tpu.matmul %12, %18, %cst_24 {dimension_numbers = #tpu.dot_dimension_numbers<[1], [0], [0], [1], [0, 0, 1, 1], [], []>} : vector<7x32xf32>, vector<32x16xf32>, vector<7x16xf32> -> vector<7x16xf32>
    %c0_25 = arith.constant 0 : index
    %c0_26 = arith.constant 0 : index
    %20 = vector.load %arg7[%c0_25, %c0_26] : memref<1x16xf32, #tpu.memory_space<vmem>>, vector<1x16xf32>
    %21 = vector.broadcast %20 : vector<1x16xf32> to vector<7x16xf32>
    %22 = arith.addf %19, %21 : vector<7x16xf32>
    %c1 = arith.constant 1 : index
    %c0_27 = arith.constant 0 : index
    %23 = vector.load %arg0[%c1, %c0_27] : memref<8x16xf32, #tpu.memory_space<vmem>>, vector<7x16xf32>
    %c0_28 = arith.constant 0 : index
    %c0_29 = arith.constant 0 : index
    %24 = vector.load %arg1[%c0_28, %c0_29] : memref<32x16xf32, #tpu.memory_space<vmem>>, vector<32x16xf32>
    %cst_30 = arith.constant dense<0.000000e+00> : vector<7x32xf32>
    %25 = tpu.matmul %23, %24, %cst_30 {dimension_numbers = #tpu.dot_dimension_numbers<[1], [1], [0], [0], [0, 0, 1, 0], [], []>} : vector<7x16xf32>, vector<32x16xf32>, vector<7x32xf32> -> vector<7x32xf32>
    %26 = arith.addf %25, %17 : vector<7x32xf32>
    %cst_31 = arith.constant 5.000000e-01 : f32
    %27 = vector.broadcast %cst_31 : f32 to vector<7x32xf32>
    %28 = arith.mulf %27, %26 : vector<7x32xf32>
    %29 = math.tanh %28 : vector<7x32xf32>
    %cst_32 = arith.constant 5.000000e-01 : f32
    %30 = vector.broadcast %cst_32 : f32 to vector<7x32xf32>
    %31 = arith.mulf %30, %29 : vector<7x32xf32>
    %cst_33 = arith.constant 5.000000e-01 : f32
    %32 = vector.broadcast %cst_33 : f32 to vector<7x32xf32>
    %33 = arith.addf %31, %32 : vector<7x32xf32>
    %c0_34 = arith.constant 0 : index
    %c0_35 = arith.constant 0 : index
    %c0_36 = arith.constant 0 : index
    %34 = vector.load %arg10[%c0_34, %c0_35, %c0_36] : memref<20x7x32xf32, #tpu.memory_space<vmem>>, vector<1x7x32xf32>
    %35 = vector.shape_cast %34 : vector<1x7x32xf32> to vector<7x32xf32>
    %36 = arith.cmpf ogt, %33, %35 : vector<7x32xf32>
    %cst_37 = arith.constant 1.000000e+00 : f32
    %cst_38 = arith.constant 0.000000e+00 : f32
    %37 = vector.broadcast %cst_37 : f32 to vector<7x32xf32>
    %38 = vector.broadcast %cst_38 : f32 to vector<7x32xf32>
    %39 = arith.select %36, %37, %38 : vector<7x32xi1>, vector<7x32xf32>
    %c0_39 = arith.constant 0 : index
    %c0_40 = arith.constant 0 : index
    %40 = vector.load %arg1[%c0_39, %c0_40] : memref<32x16xf32, #tpu.memory_space<vmem>>, vector<32x16xf32>
    %cst_41 = arith.constant dense<0.000000e+00> : vector<7x16xf32>
    %41 = tpu.matmul %39, %40, %cst_41 {dimension_numbers = #tpu.dot_dimension_numbers<[1], [0], [0], [1], [0, 0, 1, 1], [], []>} : vector<7x32xf32>, vector<32x16xf32>, vector<7x16xf32> -> vector<7x16xf32>
    %42 = arith.addf %41, %22 : vector<7x16xf32>
    %cst_42 = arith.constant 5.000000e-01 : f32
    %43 = vector.broadcast %cst_42 : f32 to vector<7x16xf32>
    %44 = arith.mulf %43, %42 : vector<7x16xf32>
    %45 = math.tanh %44 : vector<7x16xf32>
    %cst_43 = arith.constant 5.000000e-01 : f32
    %46 = vector.broadcast %cst_43 : f32 to vector<7x16xf32>
    %47 = arith.mulf %46, %45 : vector<7x16xf32>
    %cst_44 = arith.constant 5.000000e-01 : f32
    %48 = vector.broadcast %cst_44 : f32 to vector<7x16xf32>
    %49 = arith.addf %47, %48 : vector<7x16xf32>
    %c0_45 = arith.constant 0 : index
    %c0_46 = arith.constant 0 : index
    %c0_47 = arith.constant 0 : index
    %50 = vector.load %arg11[%c0_45, %c0_46, %c0_47] : memref<20x7x16xf32, #tpu.memory_space<vmem>>, vector<1x7x16xf32>
    %51 = vector.shape_cast %50 : vector<1x7x16xf32> to vector<7x16xf32>
    %52 = arith.cmpf ogt, %49, %51 : vector<7x16xf32>
    %cst_48 = arith.constant 1.000000e+00 : f32
    %cst_49 = arith.constant 0.000000e+00 : f32
    %53 = vector.broadcast %cst_48 : f32 to vector<7x16xf32>
    %54 = vector.broadcast %cst_49 : f32 to vector<7x16xf32>
    %55 = arith.select %52, %53, %54 : vector<7x16xi1>, vector<7x16xf32>
    %c0_50 = arith.constant 0 : index
    %c0_51 = arith.constant 0 : index
    %56 = vector.load %arg1[%c0_50, %c0_51] : memref<32x16xf32, #tpu.memory_space<vmem>>, vector<32x16xf32>
    %cst_52 = arith.constant dense<0.000000e+00> : vector<7x32xf32>
    %57 = tpu.matmul %55, %56, %cst_52 {dimension_numbers = #tpu.dot_dimension_numbers<[1], [1], [0], [0], [0, 0, 1, 0], [], []>} : vector<7x16xf32>, vector<32x16xf32>, vector<7x32xf32> -> vector<7x32xf32>
    %58 = arith.addf %57, %17 : vector<7x32xf32>
    %cst_53 = arith.constant 5.000000e-01 : f32
    %59 = vector.broadcast %cst_53 : f32 to vector<7x32xf32>
    %60 = arith.mulf %59, %58 : vector<7x32xf32>
    %61 = math.tanh %60 : vector<7x32xf32>
    %cst_54 = arith.constant 5.000000e-01 : f32
    %62 = vector.broadcast %cst_54 : f32 to vector<7x32xf32>
    %63 = arith.mulf %62, %61 : vector<7x32xf32>
    %cst_55 = arith.constant 5.000000e-01 : f32
    %64 = vector.broadcast %cst_55 : f32 to vector<7x32xf32>
    %65 = arith.addf %63, %64 : vector<7x32xf32>
    %c1_56 = arith.constant 1 : index
    %c0_57 = arith.constant 0 : index
    %c0_58 = arith.constant 0 : index
    %66 = vector.load %arg10[%c1_56, %c0_57, %c0_58] : memref<20x7x32xf32, #tpu.memory_space<vmem>>, vector<1x7x32xf32>
    %67 = vector.shape_cast %66 : vector<1x7x32xf32> to vector<7x32xf32>
    %68 = arith.cmpf ogt, %65, %67 : vector<7x32xf32>
    %cst_59 = arith.constant 1.000000e+00 : f32
    %cst_60 = arith.constant 0.000000e+00 : f32
    %69 = vector.broadcast %cst_59 : f32 to vector<7x32xf32>
    %70 = vector.broadcast %cst_60 : f32 to vector<7x32xf32>
    %71 = arith.select %68, %69, %70 : vector<7x32xi1>, vector<7x32xf32>
    %c0_61 = arith.constant 0 : index
    %c0_62 = arith.constant 0 : index
    %72 = vector.load %arg1[%c0_61, %c0_62] : memref<32x16xf32, #tpu.memory_space<vmem>>, vector<32x16xf32>
    %cst_63 = arith.constant dense<0.000000e+00> : vector<7x16xf32>
    %73 = tpu.matmul %71, %72, %cst_63 {dimension_numbers = #tpu.dot_dimension_numbers<[1], [0], [0], [1], [0, 0, 1, 1], [], []>} : vector<7x32xf32>, vector<32x16xf32>, vector<7x16xf32> -> vector<7x16xf32>
    %74 = arith.addf %73, %22 : vector<7x16xf32>
    %cst_64 = arith.constant 5.000000e-01 : f32
    %75 = vector.broadcast %cst_64 : f32 to vector<7x16xf32>
    %76 = arith.mulf %75, %74 : vector<7x16xf32>
    %77 = math.tanh %76 : vector<7x16xf32>
    %cst_65 = arith.constant 5.000000e-01 : f32
    %78 = vector.broadcast %cst_65 : f32 to vector<7x16xf32>
    %79 = arith.mulf %78, %77 : vector<7x16xf32>
    %cst_66 = arith.constant 5.000000e-01 : f32
    %80 = vector.broadcast %cst_66 : f32 to vector<7x16xf32>
    %81 = arith.addf %79, %80 : vector<7x16xf32>
    %c1_67 = arith.constant 1 : index
    %c0_68 = arith.constant 0 : index
    %c0_69 = arith.constant 0 : index
    %82 = vector.load %arg11[%c1_67, %c0_68, %c0_69] : memref<20x7x16xf32, #tpu.memory_space<vmem>>, vector<1x7x16xf32>
    %83 = vector.shape_cast %82 : vector<1x7x16xf32> to vector<7x16xf32>
    %84 = arith.cmpf ogt, %81, %83 : vector<7x16xf32>
    %cst_70 = arith.constant 1.000000e+00 : f32
    %cst_71 = arith.constant 0.000000e+00 : f32
    %85 = vector.broadcast %cst_70 : f32 to vector<7x16xf32>
    %86 = vector.broadcast %cst_71 : f32 to vector<7x16xf32>
    %87 = arith.select %84, %85, %86 : vector<7x16xi1>, vector<7x16xf32>
    %c0_72 = arith.constant 0 : index
    %c0_73 = arith.constant 0 : index
    %88 = vector.load %arg1[%c0_72, %c0_73] : memref<32x16xf32, #tpu.memory_space<vmem>>, vector<32x16xf32>
    %cst_74 = arith.constant dense<0.000000e+00> : vector<7x32xf32>
    %89 = tpu.matmul %87, %88, %cst_74 {dimension_numbers = #tpu.dot_dimension_numbers<[1], [1], [0], [0], [0, 0, 1, 0], [], []>} : vector<7x16xf32>, vector<32x16xf32>, vector<7x32xf32> -> vector<7x32xf32>
    %90 = arith.addf %89, %17 : vector<7x32xf32>
    %cst_75 = arith.constant 5.000000e-01 : f32
    %91 = vector.broadcast %cst_75 : f32 to vector<7x32xf32>
    %92 = arith.mulf %91, %90 : vector<7x32xf32>
    %93 = math.tanh %92 : vector<7x32xf32>
    %cst_76 = arith.constant 5.000000e-01 : f32
    %94 = vector.broadcast %cst_76 : f32 to vector<7x32xf32>
    %95 = arith.mulf %94, %93 : vector<7x32xf32>
    %cst_77 = arith.constant 5.000000e-01 : f32
    %96 = vector.broadcast %cst_77 : f32 to vector<7x32xf32>
    %97 = arith.addf %95, %96 : vector<7x32xf32>
    %c2 = arith.constant 2 : index
    %c0_78 = arith.constant 0 : index
    %c0_79 = arith.constant 0 : index
    %98 = vector.load %arg10[%c2, %c0_78, %c0_79] : memref<20x7x32xf32, #tpu.memory_space<vmem>>, vector<1x7x32xf32>
    %99 = vector.shape_cast %98 : vector<1x7x32xf32> to vector<7x32xf32>
    %100 = arith.cmpf ogt, %97, %99 : vector<7x32xf32>
    %cst_80 = arith.constant 1.000000e+00 : f32
    %cst_81 = arith.constant 0.000000e+00 : f32
    %101 = vector.broadcast %cst_80 : f32 to vector<7x32xf32>
    %102 = vector.broadcast %cst_81 : f32 to vector<7x32xf32>
    %103 = arith.select %100, %101, %102 : vector<7x32xi1>, vector<7x32xf32>
    %c0_82 = arith.constant 0 : index
    %c0_83 = arith.constant 0 : index
    %104 = vector.load %arg1[%c0_82, %c0_83] : memref<32x16xf32, #tpu.memory_space<vmem>>, vector<32x16xf32>
    %cst_84 = arith.constant dense<0.000000e+00> : vector<7x16xf32>
    %105 = tpu.matmul %103, %104, %cst_84 {dimension_numbers = #tpu.dot_dimension_numbers<[1], [0], [0], [1], [0, 0, 1, 1], [], []>} : vector<7x32xf32>, vector<32x16xf32>, vector<7x16xf32> -> vector<7x16xf32>
    %106 = arith.addf %105, %22 : vector<7x16xf32>
    %cst_85 = arith.constant 5.000000e-01 : f32
    %107 = vector.broadcast %cst_85 : f32 to vector<7x16xf32>
    %108 = arith.mulf %107, %106 : vector<7x16xf32>
    %109 = math.tanh %108 : vector<7x16xf32>
    %cst_86 = arith.constant 5.000000e-01 : f32
    %110 = vector.broadcast %cst_86 : f32 to vector<7x16xf32>
    %111 = arith.mulf %110, %109 : vector<7x16xf32>
    %cst_87 = arith.constant 5.000000e-01 : f32
    %112 = vector.broadcast %cst_87 : f32 to vector<7x16xf32>
    %113 = arith.addf %111, %112 : vector<7x16xf32>
    %c2_88 = arith.constant 2 : index
    %c0_89 = arith.constant 0 : index
    %c0_90 = arith.constant 0 : index
    %114 = vector.load %arg11[%c2_88, %c0_89, %c0_90] : memref<20x7x16xf32, #tpu.memory_space<vmem>>, vector<1x7x16xf32>
    %115 = vector.shape_cast %114 : vector<1x7x16xf32> to vector<7x16xf32>
    %116 = arith.cmpf ogt, %113, %115 : vector<7x16xf32>
    %cst_91 = arith.constant 1.000000e+00 : f32
    %cst_92 = arith.constant 0.000000e+00 : f32
    %117 = vector.broadcast %cst_91 : f32 to vector<7x16xf32>
    %118 = vector.broadcast %cst_92 : f32 to vector<7x16xf32>
    %119 = arith.select %116, %117, %118 : vector<7x16xi1>, vector<7x16xf32>
    %c0_93 = arith.constant 0 : index
    %c0_94 = arith.constant 0 : index
    %120 = vector.load %arg1[%c0_93, %c0_94] : memref<32x16xf32, #tpu.memory_space<vmem>>, vector<32x16xf32>
    %cst_95 = arith.constant dense<0.000000e+00> : vector<7x32xf32>
    %121 = tpu.matmul %119, %120, %cst_95 {dimension_numbers = #tpu.dot_dimension_numbers<[1], [1], [0], [0], [0, 0, 1, 0], [], []>} : vector<7x16xf32>, vector<32x16xf32>, vector<7x32xf32> -> vector<7x32xf32>
    %122 = arith.addf %121, %17 : vector<7x32xf32>
    %cst_96 = arith.constant 5.000000e-01 : f32
    %123 = vector.broadcast %cst_96 : f32 to vector<7x32xf32>
    %124 = arith.mulf %123, %122 : vector<7x32xf32>
    %125 = math.tanh %124 : vector<7x32xf32>
    %cst_97 = arith.constant 5.000000e-01 : f32
    %126 = vector.broadcast %cst_97 : f32 to vector<7x32xf32>
    %127 = arith.mulf %126, %125 : vector<7x32xf32>
    %cst_98 = arith.constant 5.000000e-01 : f32
    %128 = vector.broadcast %cst_98 : f32 to vector<7x32xf32>
    %129 = arith.addf %127, %128 : vector<7x32xf32>
    %c3 = arith.constant 3 : index
    %c0_99 = arith.constant 0 : index
    %c0_100 = arith.constant 0 : index
    %130 = vector.load %arg10[%c3, %c0_99, %c0_100] : memref<20x7x32xf32, #tpu.memory_space<vmem>>, vector<1x7x32xf32>
    %131 = vector.shape_cast %130 : vector<1x7x32xf32> to vector<7x32xf32>
    %132 = arith.cmpf ogt, %129, %131 : vector<7x32xf32>
    %cst_101 = arith.constant 1.000000e+00 : f32
    %cst_102 = arith.constant 0.000000e+00 : f32
    %133 = vector.broadcast %cst_101 : f32 to vector<7x32xf32>
    %134 = vector.broadcast %cst_102 : f32 to vector<7x32xf32>
    %135 = arith.select %132, %133, %134 : vector<7x32xi1>, vector<7x32xf32>
    %c0_103 = arith.constant 0 : index
    %c0_104 = arith.constant 0 : index
    %136 = vector.load %arg1[%c0_103, %c0_104] : memref<32x16xf32, #tpu.memory_space<vmem>>, vector<32x16xf32>
    %cst_105 = arith.constant dense<0.000000e+00> : vector<7x16xf32>
    %137 = tpu.matmul %135, %136, %cst_105 {dimension_numbers = #tpu.dot_dimension_numbers<[1], [0], [0], [1], [0, 0, 1, 1], [], []>} : vector<7x32xf32>, vector<32x16xf32>, vector<7x16xf32> -> vector<7x16xf32>
    %138 = arith.addf %137, %22 : vector<7x16xf32>
    %cst_106 = arith.constant 5.000000e-01 : f32
    %139 = vector.broadcast %cst_106 : f32 to vector<7x16xf32>
    %140 = arith.mulf %139, %138 : vector<7x16xf32>
    %141 = math.tanh %140 : vector<7x16xf32>
    %cst_107 = arith.constant 5.000000e-01 : f32
    %142 = vector.broadcast %cst_107 : f32 to vector<7x16xf32>
    %143 = arith.mulf %142, %141 : vector<7x16xf32>
    %cst_108 = arith.constant 5.000000e-01 : f32
    %144 = vector.broadcast %cst_108 : f32 to vector<7x16xf32>
    %145 = arith.addf %143, %144 : vector<7x16xf32>
    %c3_109 = arith.constant 3 : index
    %c0_110 = arith.constant 0 : index
    %c0_111 = arith.constant 0 : index
    %146 = vector.load %arg11[%c3_109, %c0_110, %c0_111] : memref<20x7x16xf32, #tpu.memory_space<vmem>>, vector<1x7x16xf32>
    %147 = vector.shape_cast %146 : vector<1x7x16xf32> to vector<7x16xf32>
    %148 = arith.cmpf ogt, %145, %147 : vector<7x16xf32>
    %cst_112 = arith.constant 1.000000e+00 : f32
    %cst_113 = arith.constant 0.000000e+00 : f32
    %149 = vector.broadcast %cst_112 : f32 to vector<7x16xf32>
    %150 = vector.broadcast %cst_113 : f32 to vector<7x16xf32>
    %151 = arith.select %148, %149, %150 : vector<7x16xi1>, vector<7x16xf32>
    %c0_114 = arith.constant 0 : index
    %c0_115 = arith.constant 0 : index
    %152 = vector.load %arg1[%c0_114, %c0_115] : memref<32x16xf32, #tpu.memory_space<vmem>>, vector<32x16xf32>
    %cst_116 = arith.constant dense<0.000000e+00> : vector<7x32xf32>
    %153 = tpu.matmul %151, %152, %cst_116 {dimension_numbers = #tpu.dot_dimension_numbers<[1], [1], [0], [0], [0, 0, 1, 0], [], []>} : vector<7x16xf32>, vector<32x16xf32>, vector<7x32xf32> -> vector<7x32xf32>
    %154 = arith.addf %153, %17 : vector<7x32xf32>
    %cst_117 = arith.constant 5.000000e-01 : f32
    %155 = vector.broadcast %cst_117 : f32 to vector<7x32xf32>
    %156 = arith.mulf %155, %154 : vector<7x32xf32>
    %157 = math.tanh %156 : vector<7x32xf32>
    %cst_118 = arith.constant 5.000000e-01 : f32
    %158 = vector.broadcast %cst_118 : f32 to vector<7x32xf32>
    %159 = arith.mulf %158, %157 : vector<7x32xf32>
    %cst_119 = arith.constant 5.000000e-01 : f32
    %160 = vector.broadcast %cst_119 : f32 to vector<7x32xf32>
    %161 = arith.addf %159, %160 : vector<7x32xf32>
    %c4 = arith.constant 4 : index
    %c0_120 = arith.constant 0 : index
    %c0_121 = arith.constant 0 : index
    %162 = vector.load %arg10[%c4, %c0_120, %c0_121] : memref<20x7x32xf32, #tpu.memory_space<vmem>>, vector<1x7x32xf32>
    %163 = vector.shape_cast %162 : vector<1x7x32xf32> to vector<7x32xf32>
    %164 = arith.cmpf ogt, %161, %163 : vector<7x32xf32>
    %cst_122 = arith.constant 1.000000e+00 : f32
    %cst_123 = arith.constant 0.000000e+00 : f32
    %165 = vector.broadcast %cst_122 : f32 to vector<7x32xf32>
    %166 = vector.broadcast %cst_123 : f32 to vector<7x32xf32>
    %167 = arith.select %164, %165, %166 : vector<7x32xi1>, vector<7x32xf32>
    %c0_124 = arith.constant 0 : index
    %c0_125 = arith.constant 0 : index
    %168 = vector.load %arg1[%c0_124, %c0_125] : memref<32x16xf32, #tpu.memory_space<vmem>>, vector<32x16xf32>
    %cst_126 = arith.constant dense<0.000000e+00> : vector<7x16xf32>
    %169 = tpu.matmul %167, %168, %cst_126 {dimension_numbers = #tpu.dot_dimension_numbers<[1], [0], [0], [1], [0, 0, 1, 1], [], []>} : vector<7x32xf32>, vector<32x16xf32>, vector<7x16xf32> -> vector<7x16xf32>
    %170 = arith.addf %169, %22 : vector<7x16xf32>
    %cst_127 = arith.constant 5.000000e-01 : f32
    %171 = vector.broadcast %cst_127 : f32 to vector<7x16xf32>
    %172 = arith.mulf %171, %170 : vector<7x16xf32>
    %173 = math.tanh %172 : vector<7x16xf32>
    %cst_128 = arith.constant 5.000000e-01 : f32
    %174 = vector.broadcast %cst_128 : f32 to vector<7x16xf32>
    %175 = arith.mulf %174, %173 : vector<7x16xf32>
    %cst_129 = arith.constant 5.000000e-01 : f32
    %176 = vector.broadcast %cst_129 : f32 to vector<7x16xf32>
    %177 = arith.addf %175, %176 : vector<7x16xf32>
    %c4_130 = arith.constant 4 : index
    %c0_131 = arith.constant 0 : index
    %c0_132 = arith.constant 0 : index
    %178 = vector.load %arg11[%c4_130, %c0_131, %c0_132] : memref<20x7x16xf32, #tpu.memory_space<vmem>>, vector<1x7x16xf32>
    %179 = vector.shape_cast %178 : vector<1x7x16xf32> to vector<7x16xf32>
    %180 = arith.cmpf ogt, %177, %179 : vector<7x16xf32>
    %cst_133 = arith.constant 1.000000e+00 : f32
    %cst_134 = arith.constant 0.000000e+00 : f32
    %181 = vector.broadcast %cst_133 : f32 to vector<7x16xf32>
    %182 = vector.broadcast %cst_134 : f32 to vector<7x16xf32>
    %183 = arith.select %180, %181, %182 : vector<7x16xi1>, vector<7x16xf32>
    %c0_135 = arith.constant 0 : index
    %c0_136 = arith.constant 0 : index
    %184 = vector.load %arg1[%c0_135, %c0_136] : memref<32x16xf32, #tpu.memory_space<vmem>>, vector<32x16xf32>
    %cst_137 = arith.constant dense<0.000000e+00> : vector<7x32xf32>
    %185 = tpu.matmul %183, %184, %cst_137 {dimension_numbers = #tpu.dot_dimension_numbers<[1], [1], [0], [0], [0, 0, 1, 0], [], []>} : vector<7x16xf32>, vector<32x16xf32>, vector<7x32xf32> -> vector<7x32xf32>
    %186 = arith.addf %185, %17 : vector<7x32xf32>
    %cst_138 = arith.constant 5.000000e-01 : f32
    %187 = vector.broadcast %cst_138 : f32 to vector<7x32xf32>
    %188 = arith.mulf %187, %186 : vector<7x32xf32>
    %189 = math.tanh %188 : vector<7x32xf32>
    %cst_139 = arith.constant 5.000000e-01 : f32
    %190 = vector.broadcast %cst_139 : f32 to vector<7x32xf32>
    %191 = arith.mulf %190, %189 : vector<7x32xf32>
    %cst_140 = arith.constant 5.000000e-01 : f32
    %192 = vector.broadcast %cst_140 : f32 to vector<7x32xf32>
    %193 = arith.addf %191, %192 : vector<7x32xf32>
    %c5 = arith.constant 5 : index
    %c0_141 = arith.constant 0 : index
    %c0_142 = arith.constant 0 : index
    %194 = vector.load %arg10[%c5, %c0_141, %c0_142] : memref<20x7x32xf32, #tpu.memory_space<vmem>>, vector<1x7x32xf32>
    %195 = vector.shape_cast %194 : vector<1x7x32xf32> to vector<7x32xf32>
    %196 = arith.cmpf ogt, %193, %195 : vector<7x32xf32>
    %cst_143 = arith.constant 1.000000e+00 : f32
    %cst_144 = arith.constant 0.000000e+00 : f32
    %197 = vector.broadcast %cst_143 : f32 to vector<7x32xf32>
    %198 = vector.broadcast %cst_144 : f32 to vector<7x32xf32>
    %199 = arith.select %196, %197, %198 : vector<7x32xi1>, vector<7x32xf32>
    %c0_145 = arith.constant 0 : index
    %c0_146 = arith.constant 0 : index
    %200 = vector.load %arg1[%c0_145, %c0_146] : memref<32x16xf32, #tpu.memory_space<vmem>>, vector<32x16xf32>
    %cst_147 = arith.constant dense<0.000000e+00> : vector<7x16xf32>
    %201 = tpu.matmul %199, %200, %cst_147 {dimension_numbers = #tpu.dot_dimension_numbers<[1], [0], [0], [1], [0, 0, 1, 1], [], []>} : vector<7x32xf32>, vector<32x16xf32>, vector<7x16xf32> -> vector<7x16xf32>
    %202 = arith.addf %201, %22 : vector<7x16xf32>
    %cst_148 = arith.constant 5.000000e-01 : f32
    %203 = vector.broadcast %cst_148 : f32 to vector<7x16xf32>
    %204 = arith.mulf %203, %202 : vector<7x16xf32>
    %205 = math.tanh %204 : vector<7x16xf32>
    %cst_149 = arith.constant 5.000000e-01 : f32
    %206 = vector.broadcast %cst_149 : f32 to vector<7x16xf32>
    %207 = arith.mulf %206, %205 : vector<7x16xf32>
    %cst_150 = arith.constant 5.000000e-01 : f32
    %208 = vector.broadcast %cst_150 : f32 to vector<7x16xf32>
    %209 = arith.addf %207, %208 : vector<7x16xf32>
    %c5_151 = arith.constant 5 : index
    %c0_152 = arith.constant 0 : index
    %c0_153 = arith.constant 0 : index
    %210 = vector.load %arg11[%c5_151, %c0_152, %c0_153] : memref<20x7x16xf32, #tpu.memory_space<vmem>>, vector<1x7x16xf32>
    %211 = vector.shape_cast %210 : vector<1x7x16xf32> to vector<7x16xf32>
    %212 = arith.cmpf ogt, %209, %211 : vector<7x16xf32>
    %cst_154 = arith.constant 1.000000e+00 : f32
    %cst_155 = arith.constant 0.000000e+00 : f32
    %213 = vector.broadcast %cst_154 : f32 to vector<7x16xf32>
    %214 = vector.broadcast %cst_155 : f32 to vector<7x16xf32>
    %215 = arith.select %212, %213, %214 : vector<7x16xi1>, vector<7x16xf32>
    %c0_156 = arith.constant 0 : index
    %c0_157 = arith.constant 0 : index
    %216 = vector.load %arg1[%c0_156, %c0_157] : memref<32x16xf32, #tpu.memory_space<vmem>>, vector<32x16xf32>
    %cst_158 = arith.constant dense<0.000000e+00> : vector<7x32xf32>
    %217 = tpu.matmul %215, %216, %cst_158 {dimension_numbers = #tpu.dot_dimension_numbers<[1], [1], [0], [0], [0, 0, 1, 0], [], []>} : vector<7x16xf32>, vector<32x16xf32>, vector<7x32xf32> -> vector<7x32xf32>
    %218 = arith.addf %217, %17 : vector<7x32xf32>
    %cst_159 = arith.constant 5.000000e-01 : f32
    %219 = vector.broadcast %cst_159 : f32 to vector<7x32xf32>
    %220 = arith.mulf %219, %218 : vector<7x32xf32>
    %221 = math.tanh %220 : vector<7x32xf32>
    %cst_160 = arith.constant 5.000000e-01 : f32
    %222 = vector.broadcast %cst_160 : f32 to vector<7x32xf32>
    %223 = arith.mulf %222, %221 : vector<7x32xf32>
    %cst_161 = arith.constant 5.000000e-01 : f32
    %224 = vector.broadcast %cst_161 : f32 to vector<7x32xf32>
    %225 = arith.addf %223, %224 : vector<7x32xf32>
    %c6 = arith.constant 6 : index
    %c0_162 = arith.constant 0 : index
    %c0_163 = arith.constant 0 : index
    %226 = vector.load %arg10[%c6, %c0_162, %c0_163] : memref<20x7x32xf32, #tpu.memory_space<vmem>>, vector<1x7x32xf32>
    %227 = vector.shape_cast %226 : vector<1x7x32xf32> to vector<7x32xf32>
    %228 = arith.cmpf ogt, %225, %227 : vector<7x32xf32>
    %cst_164 = arith.constant 1.000000e+00 : f32
    %cst_165 = arith.constant 0.000000e+00 : f32
    %229 = vector.broadcast %cst_164 : f32 to vector<7x32xf32>
    %230 = vector.broadcast %cst_165 : f32 to vector<7x32xf32>
    %231 = arith.select %228, %229, %230 : vector<7x32xi1>, vector<7x32xf32>
    %c0_166 = arith.constant 0 : index
    %c0_167 = arith.constant 0 : index
    %232 = vector.load %arg1[%c0_166, %c0_167] : memref<32x16xf32, #tpu.memory_space<vmem>>, vector<32x16xf32>
    %cst_168 = arith.constant dense<0.000000e+00> : vector<7x16xf32>
    %233 = tpu.matmul %231, %232, %cst_168 {dimension_numbers = #tpu.dot_dimension_numbers<[1], [0], [0], [1], [0, 0, 1, 1], [], []>} : vector<7x32xf32>, vector<32x16xf32>, vector<7x16xf32> -> vector<7x16xf32>
    %234 = arith.addf %233, %22 : vector<7x16xf32>
    %cst_169 = arith.constant 5.000000e-01 : f32
    %235 = vector.broadcast %cst_169 : f32 to vector<7x16xf32>
    %236 = arith.mulf %235, %234 : vector<7x16xf32>
    %237 = math.tanh %236 : vector<7x16xf32>
    %cst_170 = arith.constant 5.000000e-01 : f32
    %238 = vector.broadcast %cst_170 : f32 to vector<7x16xf32>
    %239 = arith.mulf %238, %237 : vector<7x16xf32>
    %cst_171 = arith.constant 5.000000e-01 : f32
    %240 = vector.broadcast %cst_171 : f32 to vector<7x16xf32>
    %241 = arith.addf %239, %240 : vector<7x16xf32>
    %c6_172 = arith.constant 6 : index
    %c0_173 = arith.constant 0 : index
    %c0_174 = arith.constant 0 : index
    %242 = vector.load %arg11[%c6_172, %c0_173, %c0_174] : memref<20x7x16xf32, #tpu.memory_space<vmem>>, vector<1x7x16xf32>
    %243 = vector.shape_cast %242 : vector<1x7x16xf32> to vector<7x16xf32>
    %244 = arith.cmpf ogt, %241, %243 : vector<7x16xf32>
    %cst_175 = arith.constant 1.000000e+00 : f32
    %cst_176 = arith.constant 0.000000e+00 : f32
    %245 = vector.broadcast %cst_175 : f32 to vector<7x16xf32>
    %246 = vector.broadcast %cst_176 : f32 to vector<7x16xf32>
    %247 = arith.select %244, %245, %246 : vector<7x16xi1>, vector<7x16xf32>
    %c0_177 = arith.constant 0 : index
    %c0_178 = arith.constant 0 : index
    %248 = vector.load %arg1[%c0_177, %c0_178] : memref<32x16xf32, #tpu.memory_space<vmem>>, vector<32x16xf32>
    %cst_179 = arith.constant dense<0.000000e+00> : vector<7x32xf32>
    %249 = tpu.matmul %247, %248, %cst_179 {dimension_numbers = #tpu.dot_dimension_numbers<[1], [1], [0], [0], [0, 0, 1, 0], [], []>} : vector<7x16xf32>, vector<32x16xf32>, vector<7x32xf32> -> vector<7x32xf32>
    %250 = arith.addf %249, %17 : vector<7x32xf32>
    %cst_180 = arith.constant 5.000000e-01 : f32
    %251 = vector.broadcast %cst_180 : f32 to vector<7x32xf32>
    %252 = arith.mulf %251, %250 : vector<7x32xf32>
    %253 = math.tanh %252 : vector<7x32xf32>
    %cst_181 = arith.constant 5.000000e-01 : f32
    %254 = vector.broadcast %cst_181 : f32 to vector<7x32xf32>
    %255 = arith.mulf %254, %253 : vector<7x32xf32>
    %cst_182 = arith.constant 5.000000e-01 : f32
    %256 = vector.broadcast %cst_182 : f32 to vector<7x32xf32>
    %257 = arith.addf %255, %256 : vector<7x32xf32>
    %c7 = arith.constant 7 : index
    %c0_183 = arith.constant 0 : index
    %c0_184 = arith.constant 0 : index
    %258 = vector.load %arg10[%c7, %c0_183, %c0_184] : memref<20x7x32xf32, #tpu.memory_space<vmem>>, vector<1x7x32xf32>
    %259 = vector.shape_cast %258 : vector<1x7x32xf32> to vector<7x32xf32>
    %260 = arith.cmpf ogt, %257, %259 : vector<7x32xf32>
    %cst_185 = arith.constant 1.000000e+00 : f32
    %cst_186 = arith.constant 0.000000e+00 : f32
    %261 = vector.broadcast %cst_185 : f32 to vector<7x32xf32>
    %262 = vector.broadcast %cst_186 : f32 to vector<7x32xf32>
    %263 = arith.select %260, %261, %262 : vector<7x32xi1>, vector<7x32xf32>
    %c0_187 = arith.constant 0 : index
    %c0_188 = arith.constant 0 : index
    %264 = vector.load %arg1[%c0_187, %c0_188] : memref<32x16xf32, #tpu.memory_space<vmem>>, vector<32x16xf32>
    %cst_189 = arith.constant dense<0.000000e+00> : vector<7x16xf32>
    %265 = tpu.matmul %263, %264, %cst_189 {dimension_numbers = #tpu.dot_dimension_numbers<[1], [0], [0], [1], [0, 0, 1, 1], [], []>} : vector<7x32xf32>, vector<32x16xf32>, vector<7x16xf32> -> vector<7x16xf32>
    %266 = arith.addf %265, %22 : vector<7x16xf32>
    %cst_190 = arith.constant 5.000000e-01 : f32
    %267 = vector.broadcast %cst_190 : f32 to vector<7x16xf32>
    %268 = arith.mulf %267, %266 : vector<7x16xf32>
    %269 = math.tanh %268 : vector<7x16xf32>
    %cst_191 = arith.constant 5.000000e-01 : f32
    %270 = vector.broadcast %cst_191 : f32 to vector<7x16xf32>
    %271 = arith.mulf %270, %269 : vector<7x16xf32>
    %cst_192 = arith.constant 5.000000e-01 : f32
    %272 = vector.broadcast %cst_192 : f32 to vector<7x16xf32>
    %273 = arith.addf %271, %272 : vector<7x16xf32>
    %c7_193 = arith.constant 7 : index
    %c0_194 = arith.constant 0 : index
    %c0_195 = arith.constant 0 : index
    %274 = vector.load %arg11[%c7_193, %c0_194, %c0_195] : memref<20x7x16xf32, #tpu.memory_space<vmem>>, vector<1x7x16xf32>
    %275 = vector.shape_cast %274 : vector<1x7x16xf32> to vector<7x16xf32>
    %276 = arith.cmpf ogt, %273, %275 : vector<7x16xf32>
    %cst_196 = arith.constant 1.000000e+00 : f32
    %cst_197 = arith.constant 0.000000e+00 : f32
    %277 = vector.broadcast %cst_196 : f32 to vector<7x16xf32>
    %278 = vector.broadcast %cst_197 : f32 to vector<7x16xf32>
    %279 = arith.select %276, %277, %278 : vector<7x16xi1>, vector<7x16xf32>
    %c0_198 = arith.constant 0 : index
    %c0_199 = arith.constant 0 : index
    %280 = vector.load %arg1[%c0_198, %c0_199] : memref<32x16xf32, #tpu.memory_space<vmem>>, vector<32x16xf32>
    %cst_200 = arith.constant dense<0.000000e+00> : vector<7x32xf32>
    %281 = tpu.matmul %279, %280, %cst_200 {dimension_numbers = #tpu.dot_dimension_numbers<[1], [1], [0], [0], [0, 0, 1, 0], [], []>} : vector<7x16xf32>, vector<32x16xf32>, vector<7x32xf32> -> vector<7x32xf32>
    %282 = arith.addf %281, %17 : vector<7x32xf32>
    %cst_201 = arith.constant 5.000000e-01 : f32
    %283 = vector.broadcast %cst_201 : f32 to vector<7x32xf32>
    %284 = arith.mulf %283, %282 : vector<7x32xf32>
    %285 = math.tanh %284 : vector<7x32xf32>
    %cst_202 = arith.constant 5.000000e-01 : f32
    %286 = vector.broadcast %cst_202 : f32 to vector<7x32xf32>
    %287 = arith.mulf %286, %285 : vector<7x32xf32>
    %cst_203 = arith.constant 5.000000e-01 : f32
    %288 = vector.broadcast %cst_203 : f32 to vector<7x32xf32>
    %289 = arith.addf %287, %288 : vector<7x32xf32>
    %c8 = arith.constant 8 : index
    %c0_204 = arith.constant 0 : index
    %c0_205 = arith.constant 0 : index
    %290 = vector.load %arg10[%c8, %c0_204, %c0_205] : memref<20x7x32xf32, #tpu.memory_space<vmem>>, vector<1x7x32xf32>
    %291 = vector.shape_cast %290 : vector<1x7x32xf32> to vector<7x32xf32>
    %292 = arith.cmpf ogt, %289, %291 : vector<7x32xf32>
    %cst_206 = arith.constant 1.000000e+00 : f32
    %cst_207 = arith.constant 0.000000e+00 : f32
    %293 = vector.broadcast %cst_206 : f32 to vector<7x32xf32>
    %294 = vector.broadcast %cst_207 : f32 to vector<7x32xf32>
    %295 = arith.select %292, %293, %294 : vector<7x32xi1>, vector<7x32xf32>
    %c0_208 = arith.constant 0 : index
    %c0_209 = arith.constant 0 : index
    %296 = vector.load %arg1[%c0_208, %c0_209] : memref<32x16xf32, #tpu.memory_space<vmem>>, vector<32x16xf32>
    %cst_210 = arith.constant dense<0.000000e+00> : vector<7x16xf32>
    %297 = tpu.matmul %295, %296, %cst_210 {dimension_numbers = #tpu.dot_dimension_numbers<[1], [0], [0], [1], [0, 0, 1, 1], [], []>} : vector<7x32xf32>, vector<32x16xf32>, vector<7x16xf32> -> vector<7x16xf32>
    %298 = arith.addf %297, %22 : vector<7x16xf32>
    %cst_211 = arith.constant 5.000000e-01 : f32
    %299 = vector.broadcast %cst_211 : f32 to vector<7x16xf32>
    %300 = arith.mulf %299, %298 : vector<7x16xf32>
    %301 = math.tanh %300 : vector<7x16xf32>
    %cst_212 = arith.constant 5.000000e-01 : f32
    %302 = vector.broadcast %cst_212 : f32 to vector<7x16xf32>
    %303 = arith.mulf %302, %301 : vector<7x16xf32>
    %cst_213 = arith.constant 5.000000e-01 : f32
    %304 = vector.broadcast %cst_213 : f32 to vector<7x16xf32>
    %305 = arith.addf %303, %304 : vector<7x16xf32>
    %c8_214 = arith.constant 8 : index
    %c0_215 = arith.constant 0 : index
    %c0_216 = arith.constant 0 : index
    %306 = vector.load %arg11[%c8_214, %c0_215, %c0_216] : memref<20x7x16xf32, #tpu.memory_space<vmem>>, vector<1x7x16xf32>
    %307 = vector.shape_cast %306 : vector<1x7x16xf32> to vector<7x16xf32>
    %308 = arith.cmpf ogt, %305, %307 : vector<7x16xf32>
    %cst_217 = arith.constant 1.000000e+00 : f32
    %cst_218 = arith.constant 0.000000e+00 : f32
    %309 = vector.broadcast %cst_217 : f32 to vector<7x16xf32>
    %310 = vector.broadcast %cst_218 : f32 to vector<7x16xf32>
    %311 = arith.select %308, %309, %310 : vector<7x16xi1>, vector<7x16xf32>
    %c0_219 = arith.constant 0 : index
    %c0_220 = arith.constant 0 : index
    %312 = vector.load %arg1[%c0_219, %c0_220] : memref<32x16xf32, #tpu.memory_space<vmem>>, vector<32x16xf32>
    %cst_221 = arith.constant dense<0.000000e+00> : vector<7x32xf32>
    %313 = tpu.matmul %311, %312, %cst_221 {dimension_numbers = #tpu.dot_dimension_numbers<[1], [1], [0], [0], [0, 0, 1, 0], [], []>} : vector<7x16xf32>, vector<32x16xf32>, vector<7x32xf32> -> vector<7x32xf32>
    %314 = arith.addf %313, %17 : vector<7x32xf32>
    %cst_222 = arith.constant 5.000000e-01 : f32
    %315 = vector.broadcast %cst_222 : f32 to vector<7x32xf32>
    %316 = arith.mulf %315, %314 : vector<7x32xf32>
    %317 = math.tanh %316 : vector<7x32xf32>
    %cst_223 = arith.constant 5.000000e-01 : f32
    %318 = vector.broadcast %cst_223 : f32 to vector<7x32xf32>
    %319 = arith.mulf %318, %317 : vector<7x32xf32>
    %cst_224 = arith.constant 5.000000e-01 : f32
    %320 = vector.broadcast %cst_224 : f32 to vector<7x32xf32>
    %321 = arith.addf %319, %320 : vector<7x32xf32>
    %c9 = arith.constant 9 : index
    %c0_225 = arith.constant 0 : index
    %c0_226 = arith.constant 0 : index
    %322 = vector.load %arg10[%c9, %c0_225, %c0_226] : memref<20x7x32xf32, #tpu.memory_space<vmem>>, vector<1x7x32xf32>
    %323 = vector.shape_cast %322 : vector<1x7x32xf32> to vector<7x32xf32>
    %324 = arith.cmpf ogt, %321, %323 : vector<7x32xf32>
    %cst_227 = arith.constant 1.000000e+00 : f32
    %cst_228 = arith.constant 0.000000e+00 : f32
    %325 = vector.broadcast %cst_227 : f32 to vector<7x32xf32>
    %326 = vector.broadcast %cst_228 : f32 to vector<7x32xf32>
    %327 = arith.select %324, %325, %326 : vector<7x32xi1>, vector<7x32xf32>
    %c0_229 = arith.constant 0 : index
    %c0_230 = arith.constant 0 : index
    %328 = vector.load %arg1[%c0_229, %c0_230] : memref<32x16xf32, #tpu.memory_space<vmem>>, vector<32x16xf32>
    %cst_231 = arith.constant dense<0.000000e+00> : vector<7x16xf32>
    %329 = tpu.matmul %327, %328, %cst_231 {dimension_numbers = #tpu.dot_dimension_numbers<[1], [0], [0], [1], [0, 0, 1, 1], [], []>} : vector<7x32xf32>, vector<32x16xf32>, vector<7x16xf32> -> vector<7x16xf32>
    %330 = arith.addf %329, %22 : vector<7x16xf32>
    %cst_232 = arith.constant 5.000000e-01 : f32
    %331 = vector.broadcast %cst_232 : f32 to vector<7x16xf32>
    %332 = arith.mulf %331, %330 : vector<7x16xf32>
    %333 = math.tanh %332 : vector<7x16xf32>
    %cst_233 = arith.constant 5.000000e-01 : f32
    %334 = vector.broadcast %cst_233 : f32 to vector<7x16xf32>
    %335 = arith.mulf %334, %333 : vector<7x16xf32>
    %cst_234 = arith.constant 5.000000e-01 : f32
    %336 = vector.broadcast %cst_234 : f32 to vector<7x16xf32>
    %337 = arith.addf %335, %336 : vector<7x16xf32>
    %c9_235 = arith.constant 9 : index
    %c0_236 = arith.constant 0 : index
    %c0_237 = arith.constant 0 : index
    %338 = vector.load %arg11[%c9_235, %c0_236, %c0_237] : memref<20x7x16xf32, #tpu.memory_space<vmem>>, vector<1x7x16xf32>
    %339 = vector.shape_cast %338 : vector<1x7x16xf32> to vector<7x16xf32>
    %340 = arith.cmpf ogt, %337, %339 : vector<7x16xf32>
    %cst_238 = arith.constant 1.000000e+00 : f32
    %cst_239 = arith.constant 0.000000e+00 : f32
    %341 = vector.broadcast %cst_238 : f32 to vector<7x16xf32>
    %342 = vector.broadcast %cst_239 : f32 to vector<7x16xf32>
    %343 = arith.select %340, %341, %342 : vector<7x16xi1>, vector<7x16xf32>
    %c0_240 = arith.constant 0 : index
    %c0_241 = arith.constant 0 : index
    %344 = vector.load %arg1[%c0_240, %c0_241] : memref<32x16xf32, #tpu.memory_space<vmem>>, vector<32x16xf32>
    %cst_242 = arith.constant dense<0.000000e+00> : vector<7x32xf32>
    %345 = tpu.matmul %343, %344, %cst_242 {dimension_numbers = #tpu.dot_dimension_numbers<[1], [1], [0], [0], [0, 0, 1, 0], [], []>} : vector<7x16xf32>, vector<32x16xf32>, vector<7x32xf32> -> vector<7x32xf32>
    %346 = arith.addf %345, %17 : vector<7x32xf32>
    %cst_243 = arith.constant 5.000000e-01 : f32
    %347 = vector.broadcast %cst_243 : f32 to vector<7x32xf32>
    %348 = arith.mulf %347, %346 : vector<7x32xf32>
    %349 = math.tanh %348 : vector<7x32xf32>
    %cst_244 = arith.constant 5.000000e-01 : f32
    %350 = vector.broadcast %cst_244 : f32 to vector<7x32xf32>
    %351 = arith.mulf %350, %349 : vector<7x32xf32>
    %cst_245 = arith.constant 5.000000e-01 : f32
    %352 = vector.broadcast %cst_245 : f32 to vector<7x32xf32>
    %353 = arith.addf %351, %352 : vector<7x32xf32>
    %c10 = arith.constant 10 : index
    %c0_246 = arith.constant 0 : index
    %c0_247 = arith.constant 0 : index
    %354 = vector.load %arg10[%c10, %c0_246, %c0_247] : memref<20x7x32xf32, #tpu.memory_space<vmem>>, vector<1x7x32xf32>
    %355 = vector.shape_cast %354 : vector<1x7x32xf32> to vector<7x32xf32>
    %356 = arith.cmpf ogt, %353, %355 : vector<7x32xf32>
    %cst_248 = arith.constant 1.000000e+00 : f32
    %cst_249 = arith.constant 0.000000e+00 : f32
    %357 = vector.broadcast %cst_248 : f32 to vector<7x32xf32>
    %358 = vector.broadcast %cst_249 : f32 to vector<7x32xf32>
    %359 = arith.select %356, %357, %358 : vector<7x32xi1>, vector<7x32xf32>
    %c0_250 = arith.constant 0 : index
    %c0_251 = arith.constant 0 : index
    %360 = vector.load %arg1[%c0_250, %c0_251] : memref<32x16xf32, #tpu.memory_space<vmem>>, vector<32x16xf32>
    %cst_252 = arith.constant dense<0.000000e+00> : vector<7x16xf32>
    %361 = tpu.matmul %359, %360, %cst_252 {dimension_numbers = #tpu.dot_dimension_numbers<[1], [0], [0], [1], [0, 0, 1, 1], [], []>} : vector<7x32xf32>, vector<32x16xf32>, vector<7x16xf32> -> vector<7x16xf32>
    %362 = arith.addf %361, %22 : vector<7x16xf32>
    %cst_253 = arith.constant 5.000000e-01 : f32
    %363 = vector.broadcast %cst_253 : f32 to vector<7x16xf32>
    %364 = arith.mulf %363, %362 : vector<7x16xf32>
    %365 = math.tanh %364 : vector<7x16xf32>
    %cst_254 = arith.constant 5.000000e-01 : f32
    %366 = vector.broadcast %cst_254 : f32 to vector<7x16xf32>
    %367 = arith.mulf %366, %365 : vector<7x16xf32>
    %cst_255 = arith.constant 5.000000e-01 : f32
    %368 = vector.broadcast %cst_255 : f32 to vector<7x16xf32>
    %369 = arith.addf %367, %368 : vector<7x16xf32>
    %c10_256 = arith.constant 10 : index
    %c0_257 = arith.constant 0 : index
    %c0_258 = arith.constant 0 : index
    %370 = vector.load %arg11[%c10_256, %c0_257, %c0_258] : memref<20x7x16xf32, #tpu.memory_space<vmem>>, vector<1x7x16xf32>
    %371 = vector.shape_cast %370 : vector<1x7x16xf32> to vector<7x16xf32>
    %372 = arith.cmpf ogt, %369, %371 : vector<7x16xf32>
    %cst_259 = arith.constant 1.000000e+00 : f32
    %cst_260 = arith.constant 0.000000e+00 : f32
    %373 = vector.broadcast %cst_259 : f32 to vector<7x16xf32>
    %374 = vector.broadcast %cst_260 : f32 to vector<7x16xf32>
    %375 = arith.select %372, %373, %374 : vector<7x16xi1>, vector<7x16xf32>
    %c0_261 = arith.constant 0 : index
    %c0_262 = arith.constant 0 : index
    %376 = vector.load %arg1[%c0_261, %c0_262] : memref<32x16xf32, #tpu.memory_space<vmem>>, vector<32x16xf32>
    %cst_263 = arith.constant dense<0.000000e+00> : vector<7x32xf32>
    %377 = tpu.matmul %375, %376, %cst_263 {dimension_numbers = #tpu.dot_dimension_numbers<[1], [1], [0], [0], [0, 0, 1, 0], [], []>} : vector<7x16xf32>, vector<32x16xf32>, vector<7x32xf32> -> vector<7x32xf32>
    %378 = arith.addf %377, %17 : vector<7x32xf32>
    %cst_264 = arith.constant 5.000000e-01 : f32
    %379 = vector.broadcast %cst_264 : f32 to vector<7x32xf32>
    %380 = arith.mulf %379, %378 : vector<7x32xf32>
    %381 = math.tanh %380 : vector<7x32xf32>
    %cst_265 = arith.constant 5.000000e-01 : f32
    %382 = vector.broadcast %cst_265 : f32 to vector<7x32xf32>
    %383 = arith.mulf %382, %381 : vector<7x32xf32>
    %cst_266 = arith.constant 5.000000e-01 : f32
    %384 = vector.broadcast %cst_266 : f32 to vector<7x32xf32>
    %385 = arith.addf %383, %384 : vector<7x32xf32>
    %c11 = arith.constant 11 : index
    %c0_267 = arith.constant 0 : index
    %c0_268 = arith.constant 0 : index
    %386 = vector.load %arg10[%c11, %c0_267, %c0_268] : memref<20x7x32xf32, #tpu.memory_space<vmem>>, vector<1x7x32xf32>
    %387 = vector.shape_cast %386 : vector<1x7x32xf32> to vector<7x32xf32>
    %388 = arith.cmpf ogt, %385, %387 : vector<7x32xf32>
    %cst_269 = arith.constant 1.000000e+00 : f32
    %cst_270 = arith.constant 0.000000e+00 : f32
    %389 = vector.broadcast %cst_269 : f32 to vector<7x32xf32>
    %390 = vector.broadcast %cst_270 : f32 to vector<7x32xf32>
    %391 = arith.select %388, %389, %390 : vector<7x32xi1>, vector<7x32xf32>
    %c0_271 = arith.constant 0 : index
    %c0_272 = arith.constant 0 : index
    %392 = vector.load %arg1[%c0_271, %c0_272] : memref<32x16xf32, #tpu.memory_space<vmem>>, vector<32x16xf32>
    %cst_273 = arith.constant dense<0.000000e+00> : vector<7x16xf32>
    %393 = tpu.matmul %391, %392, %cst_273 {dimension_numbers = #tpu.dot_dimension_numbers<[1], [0], [0], [1], [0, 0, 1, 1], [], []>} : vector<7x32xf32>, vector<32x16xf32>, vector<7x16xf32> -> vector<7x16xf32>
    %394 = arith.addf %393, %22 : vector<7x16xf32>
    %cst_274 = arith.constant 5.000000e-01 : f32
    %395 = vector.broadcast %cst_274 : f32 to vector<7x16xf32>
    %396 = arith.mulf %395, %394 : vector<7x16xf32>
    %397 = math.tanh %396 : vector<7x16xf32>
    %cst_275 = arith.constant 5.000000e-01 : f32
    %398 = vector.broadcast %cst_275 : f32 to vector<7x16xf32>
    %399 = arith.mulf %398, %397 : vector<7x16xf32>
    %cst_276 = arith.constant 5.000000e-01 : f32
    %400 = vector.broadcast %cst_276 : f32 to vector<7x16xf32>
    %401 = arith.addf %399, %400 : vector<7x16xf32>
    %c11_277 = arith.constant 11 : index
    %c0_278 = arith.constant 0 : index
    %c0_279 = arith.constant 0 : index
    %402 = vector.load %arg11[%c11_277, %c0_278, %c0_279] : memref<20x7x16xf32, #tpu.memory_space<vmem>>, vector<1x7x16xf32>
    %403 = vector.shape_cast %402 : vector<1x7x16xf32> to vector<7x16xf32>
    %404 = arith.cmpf ogt, %401, %403 : vector<7x16xf32>
    %cst_280 = arith.constant 1.000000e+00 : f32
    %cst_281 = arith.constant 0.000000e+00 : f32
    %405 = vector.broadcast %cst_280 : f32 to vector<7x16xf32>
    %406 = vector.broadcast %cst_281 : f32 to vector<7x16xf32>
    %407 = arith.select %404, %405, %406 : vector<7x16xi1>, vector<7x16xf32>
    %c0_282 = arith.constant 0 : index
    %c0_283 = arith.constant 0 : index
    %408 = vector.load %arg1[%c0_282, %c0_283] : memref<32x16xf32, #tpu.memory_space<vmem>>, vector<32x16xf32>
    %cst_284 = arith.constant dense<0.000000e+00> : vector<7x32xf32>
    %409 = tpu.matmul %407, %408, %cst_284 {dimension_numbers = #tpu.dot_dimension_numbers<[1], [1], [0], [0], [0, 0, 1, 0], [], []>} : vector<7x16xf32>, vector<32x16xf32>, vector<7x32xf32> -> vector<7x32xf32>
    %410 = arith.addf %409, %17 : vector<7x32xf32>
    %cst_285 = arith.constant 5.000000e-01 : f32
    %411 = vector.broadcast %cst_285 : f32 to vector<7x32xf32>
    %412 = arith.mulf %411, %410 : vector<7x32xf32>
    %413 = math.tanh %412 : vector<7x32xf32>
    %cst_286 = arith.constant 5.000000e-01 : f32
    %414 = vector.broadcast %cst_286 : f32 to vector<7x32xf32>
    %415 = arith.mulf %414, %413 : vector<7x32xf32>
    %cst_287 = arith.constant 5.000000e-01 : f32
    %416 = vector.broadcast %cst_287 : f32 to vector<7x32xf32>
    %417 = arith.addf %415, %416 : vector<7x32xf32>
    %c12 = arith.constant 12 : index
    %c0_288 = arith.constant 0 : index
    %c0_289 = arith.constant 0 : index
    %418 = vector.load %arg10[%c12, %c0_288, %c0_289] : memref<20x7x32xf32, #tpu.memory_space<vmem>>, vector<1x7x32xf32>
    %419 = vector.shape_cast %418 : vector<1x7x32xf32> to vector<7x32xf32>
    %420 = arith.cmpf ogt, %417, %419 : vector<7x32xf32>
    %cst_290 = arith.constant 1.000000e+00 : f32
    %cst_291 = arith.constant 0.000000e+00 : f32
    %421 = vector.broadcast %cst_290 : f32 to vector<7x32xf32>
    %422 = vector.broadcast %cst_291 : f32 to vector<7x32xf32>
    %423 = arith.select %420, %421, %422 : vector<7x32xi1>, vector<7x32xf32>
    %c0_292 = arith.constant 0 : index
    %c0_293 = arith.constant 0 : index
    %424 = vector.load %arg1[%c0_292, %c0_293] : memref<32x16xf32, #tpu.memory_space<vmem>>, vector<32x16xf32>
    %cst_294 = arith.constant dense<0.000000e+00> : vector<7x16xf32>
    %425 = tpu.matmul %423, %424, %cst_294 {dimension_numbers = #tpu.dot_dimension_numbers<[1], [0], [0], [1], [0, 0, 1, 1], [], []>} : vector<7x32xf32>, vector<32x16xf32>, vector<7x16xf32> -> vector<7x16xf32>
    %426 = arith.addf %425, %22 : vector<7x16xf32>
    %cst_295 = arith.constant 5.000000e-01 : f32
    %427 = vector.broadcast %cst_295 : f32 to vector<7x16xf32>
    %428 = arith.mulf %427, %426 : vector<7x16xf32>
    %429 = math.tanh %428 : vector<7x16xf32>
    %cst_296 = arith.constant 5.000000e-01 : f32
    %430 = vector.broadcast %cst_296 : f32 to vector<7x16xf32>
    %431 = arith.mulf %430, %429 : vector<7x16xf32>
    %cst_297 = arith.constant 5.000000e-01 : f32
    %432 = vector.broadcast %cst_297 : f32 to vector<7x16xf32>
    %433 = arith.addf %431, %432 : vector<7x16xf32>
    %c12_298 = arith.constant 12 : index
    %c0_299 = arith.constant 0 : index
    %c0_300 = arith.constant 0 : index
    %434 = vector.load %arg11[%c12_298, %c0_299, %c0_300] : memref<20x7x16xf32, #tpu.memory_space<vmem>>, vector<1x7x16xf32>
    %435 = vector.shape_cast %434 : vector<1x7x16xf32> to vector<7x16xf32>
    %436 = arith.cmpf ogt, %433, %435 : vector<7x16xf32>
    %cst_301 = arith.constant 1.000000e+00 : f32
    %cst_302 = arith.constant 0.000000e+00 : f32
    %437 = vector.broadcast %cst_301 : f32 to vector<7x16xf32>
    %438 = vector.broadcast %cst_302 : f32 to vector<7x16xf32>
    %439 = arith.select %436, %437, %438 : vector<7x16xi1>, vector<7x16xf32>
    %c0_303 = arith.constant 0 : index
    %c0_304 = arith.constant 0 : index
    %440 = vector.load %arg1[%c0_303, %c0_304] : memref<32x16xf32, #tpu.memory_space<vmem>>, vector<32x16xf32>
    %cst_305 = arith.constant dense<0.000000e+00> : vector<7x32xf32>
    %441 = tpu.matmul %439, %440, %cst_305 {dimension_numbers = #tpu.dot_dimension_numbers<[1], [1], [0], [0], [0, 0, 1, 0], [], []>} : vector<7x16xf32>, vector<32x16xf32>, vector<7x32xf32> -> vector<7x32xf32>
    %442 = arith.addf %441, %17 : vector<7x32xf32>
    %cst_306 = arith.constant 5.000000e-01 : f32
    %443 = vector.broadcast %cst_306 : f32 to vector<7x32xf32>
    %444 = arith.mulf %443, %442 : vector<7x32xf32>
    %445 = math.tanh %444 : vector<7x32xf32>
    %cst_307 = arith.constant 5.000000e-01 : f32
    %446 = vector.broadcast %cst_307 : f32 to vector<7x32xf32>
    %447 = arith.mulf %446, %445 : vector<7x32xf32>
    %cst_308 = arith.constant 5.000000e-01 : f32
    %448 = vector.broadcast %cst_308 : f32 to vector<7x32xf32>
    %449 = arith.addf %447, %448 : vector<7x32xf32>
    %c13 = arith.constant 13 : index
    %c0_309 = arith.constant 0 : index
    %c0_310 = arith.constant 0 : index
    %450 = vector.load %arg10[%c13, %c0_309, %c0_310] : memref<20x7x32xf32, #tpu.memory_space<vmem>>, vector<1x7x32xf32>
    %451 = vector.shape_cast %450 : vector<1x7x32xf32> to vector<7x32xf32>
    %452 = arith.cmpf ogt, %449, %451 : vector<7x32xf32>
    %cst_311 = arith.constant 1.000000e+00 : f32
    %cst_312 = arith.constant 0.000000e+00 : f32
    %453 = vector.broadcast %cst_311 : f32 to vector<7x32xf32>
    %454 = vector.broadcast %cst_312 : f32 to vector<7x32xf32>
    %455 = arith.select %452, %453, %454 : vector<7x32xi1>, vector<7x32xf32>
    %c0_313 = arith.constant 0 : index
    %c0_314 = arith.constant 0 : index
    %456 = vector.load %arg1[%c0_313, %c0_314] : memref<32x16xf32, #tpu.memory_space<vmem>>, vector<32x16xf32>
    %cst_315 = arith.constant dense<0.000000e+00> : vector<7x16xf32>
    %457 = tpu.matmul %455, %456, %cst_315 {dimension_numbers = #tpu.dot_dimension_numbers<[1], [0], [0], [1], [0, 0, 1, 1], [], []>} : vector<7x32xf32>, vector<32x16xf32>, vector<7x16xf32> -> vector<7x16xf32>
    %458 = arith.addf %457, %22 : vector<7x16xf32>
    %cst_316 = arith.constant 5.000000e-01 : f32
    %459 = vector.broadcast %cst_316 : f32 to vector<7x16xf32>
    %460 = arith.mulf %459, %458 : vector<7x16xf32>
    %461 = math.tanh %460 : vector<7x16xf32>
    %cst_317 = arith.constant 5.000000e-01 : f32
    %462 = vector.broadcast %cst_317 : f32 to vector<7x16xf32>
    %463 = arith.mulf %462, %461 : vector<7x16xf32>
    %cst_318 = arith.constant 5.000000e-01 : f32
    %464 = vector.broadcast %cst_318 : f32 to vector<7x16xf32>
    %465 = arith.addf %463, %464 : vector<7x16xf32>
    %c13_319 = arith.constant 13 : index
    %c0_320 = arith.constant 0 : index
    %c0_321 = arith.constant 0 : index
    %466 = vector.load %arg11[%c13_319, %c0_320, %c0_321] : memref<20x7x16xf32, #tpu.memory_space<vmem>>, vector<1x7x16xf32>
    %467 = vector.shape_cast %466 : vector<1x7x16xf32> to vector<7x16xf32>
    %468 = arith.cmpf ogt, %465, %467 : vector<7x16xf32>
    %cst_322 = arith.constant 1.000000e+00 : f32
    %cst_323 = arith.constant 0.000000e+00 : f32
    %469 = vector.broadcast %cst_322 : f32 to vector<7x16xf32>
    %470 = vector.broadcast %cst_323 : f32 to vector<7x16xf32>
    %471 = arith.select %468, %469, %470 : vector<7x16xi1>, vector<7x16xf32>
    %c0_324 = arith.constant 0 : index
    %c0_325 = arith.constant 0 : index
    %472 = vector.load %arg1[%c0_324, %c0_325] : memref<32x16xf32, #tpu.memory_space<vmem>>, vector<32x16xf32>
    %cst_326 = arith.constant dense<0.000000e+00> : vector<7x32xf32>
    %473 = tpu.matmul %471, %472, %cst_326 {dimension_numbers = #tpu.dot_dimension_numbers<[1], [1], [0], [0], [0, 0, 1, 0], [], []>} : vector<7x16xf32>, vector<32x16xf32>, vector<7x32xf32> -> vector<7x32xf32>
    %474 = arith.addf %473, %17 : vector<7x32xf32>
    %cst_327 = arith.constant 5.000000e-01 : f32
    %475 = vector.broadcast %cst_327 : f32 to vector<7x32xf32>
    %476 = arith.mulf %475, %474 : vector<7x32xf32>
    %477 = math.tanh %476 : vector<7x32xf32>
    %cst_328 = arith.constant 5.000000e-01 : f32
    %478 = vector.broadcast %cst_328 : f32 to vector<7x32xf32>
    %479 = arith.mulf %478, %477 : vector<7x32xf32>
    %cst_329 = arith.constant 5.000000e-01 : f32
    %480 = vector.broadcast %cst_329 : f32 to vector<7x32xf32>
    %481 = arith.addf %479, %480 : vector<7x32xf32>
    %c14 = arith.constant 14 : index
    %c0_330 = arith.constant 0 : index
    %c0_331 = arith.constant 0 : index
    %482 = vector.load %arg10[%c14, %c0_330, %c0_331] : memref<20x7x32xf32, #tpu.memory_space<vmem>>, vector<1x7x32xf32>
    %483 = vector.shape_cast %482 : vector<1x7x32xf32> to vector<7x32xf32>
    %484 = arith.cmpf ogt, %481, %483 : vector<7x32xf32>
    %cst_332 = arith.constant 1.000000e+00 : f32
    %cst_333 = arith.constant 0.000000e+00 : f32
    %485 = vector.broadcast %cst_332 : f32 to vector<7x32xf32>
    %486 = vector.broadcast %cst_333 : f32 to vector<7x32xf32>
    %487 = arith.select %484, %485, %486 : vector<7x32xi1>, vector<7x32xf32>
    %c0_334 = arith.constant 0 : index
    %c0_335 = arith.constant 0 : index
    %488 = vector.load %arg1[%c0_334, %c0_335] : memref<32x16xf32, #tpu.memory_space<vmem>>, vector<32x16xf32>
    %cst_336 = arith.constant dense<0.000000e+00> : vector<7x16xf32>
    %489 = tpu.matmul %487, %488, %cst_336 {dimension_numbers = #tpu.dot_dimension_numbers<[1], [0], [0], [1], [0, 0, 1, 1], [], []>} : vector<7x32xf32>, vector<32x16xf32>, vector<7x16xf32> -> vector<7x16xf32>
    %490 = arith.addf %489, %22 : vector<7x16xf32>
    %cst_337 = arith.constant 5.000000e-01 : f32
    %491 = vector.broadcast %cst_337 : f32 to vector<7x16xf32>
    %492 = arith.mulf %491, %490 : vector<7x16xf32>
    %493 = math.tanh %492 : vector<7x16xf32>
    %cst_338 = arith.constant 5.000000e-01 : f32
    %494 = vector.broadcast %cst_338 : f32 to vector<7x16xf32>
    %495 = arith.mulf %494, %493 : vector<7x16xf32>
    %cst_339 = arith.constant 5.000000e-01 : f32
    %496 = vector.broadcast %cst_339 : f32 to vector<7x16xf32>
    %497 = arith.addf %495, %496 : vector<7x16xf32>
    %c14_340 = arith.constant 14 : index
    %c0_341 = arith.constant 0 : index
    %c0_342 = arith.constant 0 : index
    %498 = vector.load %arg11[%c14_340, %c0_341, %c0_342] : memref<20x7x16xf32, #tpu.memory_space<vmem>>, vector<1x7x16xf32>
    %499 = vector.shape_cast %498 : vector<1x7x16xf32> to vector<7x16xf32>
    %500 = arith.cmpf ogt, %497, %499 : vector<7x16xf32>
    %cst_343 = arith.constant 1.000000e+00 : f32
    %cst_344 = arith.constant 0.000000e+00 : f32
    %501 = vector.broadcast %cst_343 : f32 to vector<7x16xf32>
    %502 = vector.broadcast %cst_344 : f32 to vector<7x16xf32>
    %503 = arith.select %500, %501, %502 : vector<7x16xi1>, vector<7x16xf32>
    %c0_345 = arith.constant 0 : index
    %c0_346 = arith.constant 0 : index
    %504 = vector.load %arg1[%c0_345, %c0_346] : memref<32x16xf32, #tpu.memory_space<vmem>>, vector<32x16xf32>
    %cst_347 = arith.constant dense<0.000000e+00> : vector<7x32xf32>
    %505 = tpu.matmul %503, %504, %cst_347 {dimension_numbers = #tpu.dot_dimension_numbers<[1], [1], [0], [0], [0, 0, 1, 0], [], []>} : vector<7x16xf32>, vector<32x16xf32>, vector<7x32xf32> -> vector<7x32xf32>
    %506 = arith.addf %505, %17 : vector<7x32xf32>
    %cst_348 = arith.constant 5.000000e-01 : f32
    %507 = vector.broadcast %cst_348 : f32 to vector<7x32xf32>
    %508 = arith.mulf %507, %506 : vector<7x32xf32>
    %509 = math.tanh %508 : vector<7x32xf32>
    %cst_349 = arith.constant 5.000000e-01 : f32
    %510 = vector.broadcast %cst_349 : f32 to vector<7x32xf32>
    %511 = arith.mulf %510, %509 : vector<7x32xf32>
    %cst_350 = arith.constant 5.000000e-01 : f32
    %512 = vector.broadcast %cst_350 : f32 to vector<7x32xf32>
    %513 = arith.addf %511, %512 : vector<7x32xf32>
    %c15 = arith.constant 15 : index
    %c0_351 = arith.constant 0 : index
    %c0_352 = arith.constant 0 : index
    %514 = vector.load %arg10[%c15, %c0_351, %c0_352] : memref<20x7x32xf32, #tpu.memory_space<vmem>>, vector<1x7x32xf32>
    %515 = vector.shape_cast %514 : vector<1x7x32xf32> to vector<7x32xf32>
    %516 = arith.cmpf ogt, %513, %515 : vector<7x32xf32>
    %cst_353 = arith.constant 1.000000e+00 : f32
    %cst_354 = arith.constant 0.000000e+00 : f32
    %517 = vector.broadcast %cst_353 : f32 to vector<7x32xf32>
    %518 = vector.broadcast %cst_354 : f32 to vector<7x32xf32>
    %519 = arith.select %516, %517, %518 : vector<7x32xi1>, vector<7x32xf32>
    %c0_355 = arith.constant 0 : index
    %c0_356 = arith.constant 0 : index
    %520 = vector.load %arg1[%c0_355, %c0_356] : memref<32x16xf32, #tpu.memory_space<vmem>>, vector<32x16xf32>
    %cst_357 = arith.constant dense<0.000000e+00> : vector<7x16xf32>
    %521 = tpu.matmul %519, %520, %cst_357 {dimension_numbers = #tpu.dot_dimension_numbers<[1], [0], [0], [1], [0, 0, 1, 1], [], []>} : vector<7x32xf32>, vector<32x16xf32>, vector<7x16xf32> -> vector<7x16xf32>
    %522 = arith.addf %521, %22 : vector<7x16xf32>
    %cst_358 = arith.constant 5.000000e-01 : f32
    %523 = vector.broadcast %cst_358 : f32 to vector<7x16xf32>
    %524 = arith.mulf %523, %522 : vector<7x16xf32>
    %525 = math.tanh %524 : vector<7x16xf32>
    %cst_359 = arith.constant 5.000000e-01 : f32
    %526 = vector.broadcast %cst_359 : f32 to vector<7x16xf32>
    %527 = arith.mulf %526, %525 : vector<7x16xf32>
    %cst_360 = arith.constant 5.000000e-01 : f32
    %528 = vector.broadcast %cst_360 : f32 to vector<7x16xf32>
    %529 = arith.addf %527, %528 : vector<7x16xf32>
    %c15_361 = arith.constant 15 : index
    %c0_362 = arith.constant 0 : index
    %c0_363 = arith.constant 0 : index
    %530 = vector.load %arg11[%c15_361, %c0_362, %c0_363] : memref<20x7x16xf32, #tpu.memory_space<vmem>>, vector<1x7x16xf32>
    %531 = vector.shape_cast %530 : vector<1x7x16xf32> to vector<7x16xf32>
    %532 = arith.cmpf ogt, %529, %531 : vector<7x16xf32>
    %cst_364 = arith.constant 1.000000e+00 : f32
    %cst_365 = arith.constant 0.000000e+00 : f32
    %533 = vector.broadcast %cst_364 : f32 to vector<7x16xf32>
    %534 = vector.broadcast %cst_365 : f32 to vector<7x16xf32>
    %535 = arith.select %532, %533, %534 : vector<7x16xi1>, vector<7x16xf32>
    %c0_366 = arith.constant 0 : index
    %c0_367 = arith.constant 0 : index
    %536 = vector.load %arg1[%c0_366, %c0_367] : memref<32x16xf32, #tpu.memory_space<vmem>>, vector<32x16xf32>
    %cst_368 = arith.constant dense<0.000000e+00> : vector<7x32xf32>
    %537 = tpu.matmul %535, %536, %cst_368 {dimension_numbers = #tpu.dot_dimension_numbers<[1], [1], [0], [0], [0, 0, 1, 0], [], []>} : vector<7x16xf32>, vector<32x16xf32>, vector<7x32xf32> -> vector<7x32xf32>
    %538 = arith.addf %537, %17 : vector<7x32xf32>
    %cst_369 = arith.constant 5.000000e-01 : f32
    %539 = vector.broadcast %cst_369 : f32 to vector<7x32xf32>
    %540 = arith.mulf %539, %538 : vector<7x32xf32>
    %541 = math.tanh %540 : vector<7x32xf32>
    %cst_370 = arith.constant 5.000000e-01 : f32
    %542 = vector.broadcast %cst_370 : f32 to vector<7x32xf32>
    %543 = arith.mulf %542, %541 : vector<7x32xf32>
    %cst_371 = arith.constant 5.000000e-01 : f32
    %544 = vector.broadcast %cst_371 : f32 to vector<7x32xf32>
    %545 = arith.addf %543, %544 : vector<7x32xf32>
    %c16 = arith.constant 16 : index
    %c0_372 = arith.constant 0 : index
    %c0_373 = arith.constant 0 : index
    %546 = vector.load %arg10[%c16, %c0_372, %c0_373] : memref<20x7x32xf32, #tpu.memory_space<vmem>>, vector<1x7x32xf32>
    %547 = vector.shape_cast %546 : vector<1x7x32xf32> to vector<7x32xf32>
    %548 = arith.cmpf ogt, %545, %547 : vector<7x32xf32>
    %cst_374 = arith.constant 1.000000e+00 : f32
    %cst_375 = arith.constant 0.000000e+00 : f32
    %549 = vector.broadcast %cst_374 : f32 to vector<7x32xf32>
    %550 = vector.broadcast %cst_375 : f32 to vector<7x32xf32>
    %551 = arith.select %548, %549, %550 : vector<7x32xi1>, vector<7x32xf32>
    %c0_376 = arith.constant 0 : index
    %c0_377 = arith.constant 0 : index
    %552 = vector.load %arg1[%c0_376, %c0_377] : memref<32x16xf32, #tpu.memory_space<vmem>>, vector<32x16xf32>
    %cst_378 = arith.constant dense<0.000000e+00> : vector<7x16xf32>
    %553 = tpu.matmul %551, %552, %cst_378 {dimension_numbers = #tpu.dot_dimension_numbers<[1], [0], [0], [1], [0, 0, 1, 1], [], []>} : vector<7x32xf32>, vector<32x16xf32>, vector<7x16xf32> -> vector<7x16xf32>
    %554 = arith.addf %553, %22 : vector<7x16xf32>
    %cst_379 = arith.constant 5.000000e-01 : f32
    %555 = vector.broadcast %cst_379 : f32 to vector<7x16xf32>
    %556 = arith.mulf %555, %554 : vector<7x16xf32>
    %557 = math.tanh %556 : vector<7x16xf32>
    %cst_380 = arith.constant 5.000000e-01 : f32
    %558 = vector.broadcast %cst_380 : f32 to vector<7x16xf32>
    %559 = arith.mulf %558, %557 : vector<7x16xf32>
    %cst_381 = arith.constant 5.000000e-01 : f32
    %560 = vector.broadcast %cst_381 : f32 to vector<7x16xf32>
    %561 = arith.addf %559, %560 : vector<7x16xf32>
    %c16_382 = arith.constant 16 : index
    %c0_383 = arith.constant 0 : index
    %c0_384 = arith.constant 0 : index
    %562 = vector.load %arg11[%c16_382, %c0_383, %c0_384] : memref<20x7x16xf32, #tpu.memory_space<vmem>>, vector<1x7x16xf32>
    %563 = vector.shape_cast %562 : vector<1x7x16xf32> to vector<7x16xf32>
    %564 = arith.cmpf ogt, %561, %563 : vector<7x16xf32>
    %cst_385 = arith.constant 1.000000e+00 : f32
    %cst_386 = arith.constant 0.000000e+00 : f32
    %565 = vector.broadcast %cst_385 : f32 to vector<7x16xf32>
    %566 = vector.broadcast %cst_386 : f32 to vector<7x16xf32>
    %567 = arith.select %564, %565, %566 : vector<7x16xi1>, vector<7x16xf32>
    %c0_387 = arith.constant 0 : index
    %c0_388 = arith.constant 0 : index
    %568 = vector.load %arg1[%c0_387, %c0_388] : memref<32x16xf32, #tpu.memory_space<vmem>>, vector<32x16xf32>
    %cst_389 = arith.constant dense<0.000000e+00> : vector<7x32xf32>
    %569 = tpu.matmul %567, %568, %cst_389 {dimension_numbers = #tpu.dot_dimension_numbers<[1], [1], [0], [0], [0, 0, 1, 0], [], []>} : vector<7x16xf32>, vector<32x16xf32>, vector<7x32xf32> -> vector<7x32xf32>
    %570 = arith.addf %569, %17 : vector<7x32xf32>
    %cst_390 = arith.constant 5.000000e-01 : f32
    %571 = vector.broadcast %cst_390 : f32 to vector<7x32xf32>
    %572 = arith.mulf %571, %570 : vector<7x32xf32>
    %573 = math.tanh %572 : vector<7x32xf32>
    %cst_391 = arith.constant 5.000000e-01 : f32
    %574 = vector.broadcast %cst_391 : f32 to vector<7x32xf32>
    %575 = arith.mulf %574, %573 : vector<7x32xf32>
    %cst_392 = arith.constant 5.000000e-01 : f32
    %576 = vector.broadcast %cst_392 : f32 to vector<7x32xf32>
    %577 = arith.addf %575, %576 : vector<7x32xf32>
    %c17 = arith.constant 17 : index
    %c0_393 = arith.constant 0 : index
    %c0_394 = arith.constant 0 : index
    %578 = vector.load %arg10[%c17, %c0_393, %c0_394] : memref<20x7x32xf32, #tpu.memory_space<vmem>>, vector<1x7x32xf32>
    %579 = vector.shape_cast %578 : vector<1x7x32xf32> to vector<7x32xf32>
    %580 = arith.cmpf ogt, %577, %579 : vector<7x32xf32>
    %cst_395 = arith.constant 1.000000e+00 : f32
    %cst_396 = arith.constant 0.000000e+00 : f32
    %581 = vector.broadcast %cst_395 : f32 to vector<7x32xf32>
    %582 = vector.broadcast %cst_396 : f32 to vector<7x32xf32>
    %583 = arith.select %580, %581, %582 : vector<7x32xi1>, vector<7x32xf32>
    %c0_397 = arith.constant 0 : index
    %c0_398 = arith.constant 0 : index
    %584 = vector.load %arg1[%c0_397, %c0_398] : memref<32x16xf32, #tpu.memory_space<vmem>>, vector<32x16xf32>
    %cst_399 = arith.constant dense<0.000000e+00> : vector<7x16xf32>
    %585 = tpu.matmul %583, %584, %cst_399 {dimension_numbers = #tpu.dot_dimension_numbers<[1], [0], [0], [1], [0, 0, 1, 1], [], []>} : vector<7x32xf32>, vector<32x16xf32>, vector<7x16xf32> -> vector<7x16xf32>
    %586 = arith.addf %585, %22 : vector<7x16xf32>
    %cst_400 = arith.constant 5.000000e-01 : f32
    %587 = vector.broadcast %cst_400 : f32 to vector<7x16xf32>
    %588 = arith.mulf %587, %586 : vector<7x16xf32>
    %589 = math.tanh %588 : vector<7x16xf32>
    %cst_401 = arith.constant 5.000000e-01 : f32
    %590 = vector.broadcast %cst_401 : f32 to vector<7x16xf32>
    %591 = arith.mulf %590, %589 : vector<7x16xf32>
    %cst_402 = arith.constant 5.000000e-01 : f32
    %592 = vector.broadcast %cst_402 : f32 to vector<7x16xf32>
    %593 = arith.addf %591, %592 : vector<7x16xf32>
    %c17_403 = arith.constant 17 : index
    %c0_404 = arith.constant 0 : index
    %c0_405 = arith.constant 0 : index
    %594 = vector.load %arg11[%c17_403, %c0_404, %c0_405] : memref<20x7x16xf32, #tpu.memory_space<vmem>>, vector<1x7x16xf32>
    %595 = vector.shape_cast %594 : vector<1x7x16xf32> to vector<7x16xf32>
    %596 = arith.cmpf ogt, %593, %595 : vector<7x16xf32>
    %cst_406 = arith.constant 1.000000e+00 : f32
    %cst_407 = arith.constant 0.000000e+00 : f32
    %597 = vector.broadcast %cst_406 : f32 to vector<7x16xf32>
    %598 = vector.broadcast %cst_407 : f32 to vector<7x16xf32>
    %599 = arith.select %596, %597, %598 : vector<7x16xi1>, vector<7x16xf32>
    %c0_408 = arith.constant 0 : index
    %c0_409 = arith.constant 0 : index
    %600 = vector.load %arg1[%c0_408, %c0_409] : memref<32x16xf32, #tpu.memory_space<vmem>>, vector<32x16xf32>
    %cst_410 = arith.constant dense<0.000000e+00> : vector<7x32xf32>
    %601 = tpu.matmul %599, %600, %cst_410 {dimension_numbers = #tpu.dot_dimension_numbers<[1], [1], [0], [0], [0, 0, 1, 0], [], []>} : vector<7x16xf32>, vector<32x16xf32>, vector<7x32xf32> -> vector<7x32xf32>
    %602 = arith.addf %601, %17 : vector<7x32xf32>
    %cst_411 = arith.constant 5.000000e-01 : f32
    %603 = vector.broadcast %cst_411 : f32 to vector<7x32xf32>
    %604 = arith.mulf %603, %602 : vector<7x32xf32>
    %605 = math.tanh %604 : vector<7x32xf32>
    %cst_412 = arith.constant 5.000000e-01 : f32
    %606 = vector.broadcast %cst_412 : f32 to vector<7x32xf32>
    %607 = arith.mulf %606, %605 : vector<7x32xf32>
    %cst_413 = arith.constant 5.000000e-01 : f32
    %608 = vector.broadcast %cst_413 : f32 to vector<7x32xf32>
    %609 = arith.addf %607, %608 : vector<7x32xf32>
    %c18 = arith.constant 18 : index
    %c0_414 = arith.constant 0 : index
    %c0_415 = arith.constant 0 : index
    %610 = vector.load %arg10[%c18, %c0_414, %c0_415] : memref<20x7x32xf32, #tpu.memory_space<vmem>>, vector<1x7x32xf32>
    %611 = vector.shape_cast %610 : vector<1x7x32xf32> to vector<7x32xf32>
    %612 = arith.cmpf ogt, %609, %611 : vector<7x32xf32>
    %cst_416 = arith.constant 1.000000e+00 : f32
    %cst_417 = arith.constant 0.000000e+00 : f32
    %613 = vector.broadcast %cst_416 : f32 to vector<7x32xf32>
    %614 = vector.broadcast %cst_417 : f32 to vector<7x32xf32>
    %615 = arith.select %612, %613, %614 : vector<7x32xi1>, vector<7x32xf32>
    %c0_418 = arith.constant 0 : index
    %c0_419 = arith.constant 0 : index
    %616 = vector.load %arg1[%c0_418, %c0_419] : memref<32x16xf32, #tpu.memory_space<vmem>>, vector<32x16xf32>
    %cst_420 = arith.constant dense<0.000000e+00> : vector<7x16xf32>
    %617 = tpu.matmul %615, %616, %cst_420 {dimension_numbers = #tpu.dot_dimension_numbers<[1], [0], [0], [1], [0, 0, 1, 1], [], []>} : vector<7x32xf32>, vector<32x16xf32>, vector<7x16xf32> -> vector<7x16xf32>
    %618 = arith.addf %617, %22 : vector<7x16xf32>
    %cst_421 = arith.constant 5.000000e-01 : f32
    %619 = vector.broadcast %cst_421 : f32 to vector<7x16xf32>
    %620 = arith.mulf %619, %618 : vector<7x16xf32>
    %621 = math.tanh %620 : vector<7x16xf32>
    %cst_422 = arith.constant 5.000000e-01 : f32
    %622 = vector.broadcast %cst_422 : f32 to vector<7x16xf32>
    %623 = arith.mulf %622, %621 : vector<7x16xf32>
    %cst_423 = arith.constant 5.000000e-01 : f32
    %624 = vector.broadcast %cst_423 : f32 to vector<7x16xf32>
    %625 = arith.addf %623, %624 : vector<7x16xf32>
    %c18_424 = arith.constant 18 : index
    %c0_425 = arith.constant 0 : index
    %c0_426 = arith.constant 0 : index
    %626 = vector.load %arg11[%c18_424, %c0_425, %c0_426] : memref<20x7x16xf32, #tpu.memory_space<vmem>>, vector<1x7x16xf32>
    %627 = vector.shape_cast %626 : vector<1x7x16xf32> to vector<7x16xf32>
    %628 = arith.cmpf ogt, %625, %627 : vector<7x16xf32>
    %cst_427 = arith.constant 1.000000e+00 : f32
    %cst_428 = arith.constant 0.000000e+00 : f32
    %629 = vector.broadcast %cst_427 : f32 to vector<7x16xf32>
    %630 = vector.broadcast %cst_428 : f32 to vector<7x16xf32>
    %631 = arith.select %628, %629, %630 : vector<7x16xi1>, vector<7x16xf32>
    %c0_429 = arith.constant 0 : index
    %c0_430 = arith.constant 0 : index
    %632 = vector.load %arg1[%c0_429, %c0_430] : memref<32x16xf32, #tpu.memory_space<vmem>>, vector<32x16xf32>
    %cst_431 = arith.constant dense<0.000000e+00> : vector<7x32xf32>
    %633 = tpu.matmul %631, %632, %cst_431 {dimension_numbers = #tpu.dot_dimension_numbers<[1], [1], [0], [0], [0, 0, 1, 0], [], []>} : vector<7x16xf32>, vector<32x16xf32>, vector<7x32xf32> -> vector<7x32xf32>
    %634 = arith.addf %633, %17 : vector<7x32xf32>
    %cst_432 = arith.constant 5.000000e-01 : f32
    %635 = vector.broadcast %cst_432 : f32 to vector<7x32xf32>
    %636 = arith.mulf %635, %634 : vector<7x32xf32>
    %637 = math.tanh %636 : vector<7x32xf32>
    %cst_433 = arith.constant 5.000000e-01 : f32
    %638 = vector.broadcast %cst_433 : f32 to vector<7x32xf32>
    %639 = arith.mulf %638, %637 : vector<7x32xf32>
    %cst_434 = arith.constant 5.000000e-01 : f32
    %640 = vector.broadcast %cst_434 : f32 to vector<7x32xf32>
    %641 = arith.addf %639, %640 : vector<7x32xf32>
    %c19 = arith.constant 19 : index
    %c0_435 = arith.constant 0 : index
    %c0_436 = arith.constant 0 : index
    %642 = vector.load %arg10[%c19, %c0_435, %c0_436] : memref<20x7x32xf32, #tpu.memory_space<vmem>>, vector<1x7x32xf32>
    %643 = vector.shape_cast %642 : vector<1x7x32xf32> to vector<7x32xf32>
    %644 = arith.cmpf ogt, %641, %643 : vector<7x32xf32>
    %cst_437 = arith.constant 1.000000e+00 : f32
    %cst_438 = arith.constant 0.000000e+00 : f32
    %645 = vector.broadcast %cst_437 : f32 to vector<7x32xf32>
    %646 = vector.broadcast %cst_438 : f32 to vector<7x32xf32>
    %647 = arith.select %644, %645, %646 : vector<7x32xi1>, vector<7x32xf32>
    %c0_439 = arith.constant 0 : index
    %c0_440 = arith.constant 0 : index
    %648 = vector.load %arg1[%c0_439, %c0_440] : memref<32x16xf32, #tpu.memory_space<vmem>>, vector<32x16xf32>
    %cst_441 = arith.constant dense<0.000000e+00> : vector<7x16xf32>
    %649 = tpu.matmul %647, %648, %cst_441 {dimension_numbers = #tpu.dot_dimension_numbers<[1], [0], [0], [1], [0, 0, 1, 1], [], []>} : vector<7x32xf32>, vector<32x16xf32>, vector<7x16xf32> -> vector<7x16xf32>
    %650 = arith.addf %649, %22 : vector<7x16xf32>
    %cst_442 = arith.constant 5.000000e-01 : f32
    %651 = vector.broadcast %cst_442 : f32 to vector<7x16xf32>
    %652 = arith.mulf %651, %650 : vector<7x16xf32>
    %653 = math.tanh %652 : vector<7x16xf32>
    %cst_443 = arith.constant 5.000000e-01 : f32
    %654 = vector.broadcast %cst_443 : f32 to vector<7x16xf32>
    %655 = arith.mulf %654, %653 : vector<7x16xf32>
    %cst_444 = arith.constant 5.000000e-01 : f32
    %656 = vector.broadcast %cst_444 : f32 to vector<7x16xf32>
    %657 = arith.addf %655, %656 : vector<7x16xf32>
    %c19_445 = arith.constant 19 : index
    %c0_446 = arith.constant 0 : index
    %c0_447 = arith.constant 0 : index
    %658 = vector.load %arg11[%c19_445, %c0_446, %c0_447] : memref<20x7x16xf32, #tpu.memory_space<vmem>>, vector<1x7x16xf32>
    %659 = vector.shape_cast %658 : vector<1x7x16xf32> to vector<7x16xf32>
    %660 = arith.cmpf ogt, %657, %659 : vector<7x16xf32>
    %cst_448 = arith.constant 1.000000e+00 : f32
    %cst_449 = arith.constant 0.000000e+00 : f32
    %661 = vector.broadcast %cst_448 : f32 to vector<7x16xf32>
    %662 = vector.broadcast %cst_449 : f32 to vector<7x16xf32>
    %663 = arith.select %660, %661, %662 : vector<7x16xi1>, vector<7x16xf32>
    %cst_450 = arith.constant 5.000000e-01 : f32
    %664 = vector.broadcast %cst_450 : f32 to vector<7x16xf32>
    %665 = arith.mulf %664, %22 : vector<7x16xf32>
    %666 = math.tanh %665 : vector<7x16xf32>
    %cst_451 = arith.constant 5.000000e-01 : f32
    %667 = vector.broadcast %cst_451 : f32 to vector<7x16xf32>
    %668 = arith.mulf %667, %666 : vector<7x16xf32>
    %cst_452 = arith.constant 5.000000e-01 : f32
    %669 = vector.broadcast %cst_452 : f32 to vector<7x16xf32>
    %670 = arith.addf %668, %669 : vector<7x16xf32>
    %cst_453 = arith.constant 0.000000e+00 : f32
    %671 = vector.broadcast %cst_453 : f32 to vector<7x16xf32>
    %672 = arith.subf %671, %23 : vector<7x16xf32>
    %cst_454 = arith.constant 9.99999997E-7 : f32
    %673 = vector.broadcast %cst_454 : f32 to vector<7x16xf32>
    %674 = arith.addf %673, %670 : vector<7x16xf32>
    %675 = math.log %674 : vector<7x16xf32>
    %676 = arith.mulf %672, %675 : vector<7x16xf32>
    %cst_455 = arith.constant 1.000000e+00 : f32
    %677 = vector.broadcast %cst_455 : f32 to vector<7x16xf32>
    %678 = arith.subf %677, %23 : vector<7x16xf32>
    %cst_456 = arith.constant 1.00000095 : f32
    %679 = vector.broadcast %cst_456 : f32 to vector<7x16xf32>
    %680 = arith.subf %679, %670 : vector<7x16xf32>
    %681 = math.log %680 : vector<7x16xf32>
    %682 = arith.mulf %678, %681 : vector<7x16xf32>
    %683 = arith.subf %676, %682 : vector<7x16xf32>
    %cst_457 = arith.constant dense<0.000000e+00> : vector<7xf32>
    %684 = vector.multi_reduction <add>, %683, %cst_457 [1] : vector<7x16xf32> to vector<7xf32>
    %685 = vector.shape_cast %684 : vector<7xf32> to vector<7x1xf32>
    %cst_458 = arith.constant dense<0.000000e+00> : vector<1xf32>
    %686 = vector.multi_reduction <add>, %685, %cst_458 [0] : vector<7x1xf32> to vector<1xf32>
    %687 = vector.shape_cast %686 : vector<1xf32> to vector<1x1xf32>
    %c0_459 = arith.constant 0 : index
    %c0_460 = arith.constant 0 : index
    %688 = vector.load %arg3[%c0_459, %c0_460] : memref<32x16xf32, #tpu.memory_space<vmem>>, vector<32x16xf32>
    %689 = arith.mulf %688, %688 : vector<32x16xf32>
    %cst_461 = arith.constant dense<0.000000e+00> : vector<32xf32>
    %690 = vector.multi_reduction <add>, %689, %cst_461 [1] : vector<32x16xf32> to vector<32xf32>
    %691 = vector.shape_cast %690 : vector<32xf32> to vector<32x1xf32>
    %cst_462 = arith.constant dense<0.000000e+00> : vector<1xf32>
    %692 = vector.multi_reduction <add>, %691, %cst_462 [0] : vector<32x1xf32> to vector<1xf32>
    %693 = vector.shape_cast %692 : vector<1xf32> to vector<1x1xf32>
    %694 = math.sqrt %693 : vector<1x1xf32>
    %c0_463 = arith.constant 0 : index
    %c0_464 = arith.constant 0 : index
    %695 = vector.load %arg2[%c0_463, %c0_464] : memref<32x32xf32, #tpu.memory_space<vmem>>, vector<32x32xf32>
    %696 = arith.mulf %695, %695 : vector<32x32xf32>
    %cst_465 = arith.constant dense<0.000000e+00> : vector<32xf32>
    %697 = vector.multi_reduction <add>, %696, %cst_465 [1] : vector<32x32xf32> to vector<32xf32>
    %698 = vector.shape_cast %697 : vector<32xf32> to vector<32x1xf32>
    %cst_466 = arith.constant dense<0.000000e+00> : vector<1xf32>
    %699 = vector.multi_reduction <add>, %698, %cst_466 [0] : vector<32x1xf32> to vector<1xf32>
    %700 = vector.shape_cast %699 : vector<1xf32> to vector<1x1xf32>
    %701 = math.sqrt %700 : vector<1x1xf32>
    %702 = arith.addf %694, %701 : vector<1x1xf32>
    %cst_467 = arith.constant 2.000000e-01 : f32
    %703 = vector.broadcast %cst_467 : f32 to vector<1x1xf32>
    %704 = arith.mulf %703, %702 : vector<1x1xf32>
    %cst_468 = arith.constant 1.250000e-01 : f32
    %705 = vector.broadcast %cst_468 : f32 to vector<1x1xf32>
    %706 = arith.mulf %687, %705 : vector<1x1xf32>
    %707 = arith.addf %706, %704 : vector<1x1xf32>
    %c0_469 = arith.constant 0 : index
    %c0_470 = arith.constant 0 : index
    %708 = vector.load %arg12[%c0_469, %c0_470] : memref<1x1xf32, #tpu.memory_space<vmem>>, vector<1x1xf32>
    tpu.vector_store %arg12[%c0_469, %c0_470], %707 {strides = array<i32>} : memref<1x1xf32, #tpu.memory_space<vmem>>, vector<1x1xf32>,
    %c0_471 = arith.constant 0 : index
    %c0_472 = arith.constant 0 : index
    %709 = vector.load %arg14[%c0_471, %c0_472] : memref<1x1xf32, #tpu.memory_space<vmem>>, vector<1x1xf32>
    tpu.vector_store %arg14[%c0_471, %c0_472], %704 {strides = array<i32>} : memref<1x1xf32, #tpu.memory_space<vmem>>, vector<1x1xf32>,
    %710 = arith.subf %23, %663 : vector<7x16xf32>
    %711 = math.absf %710 : vector<7x16xf32>
    %cst_473 = arith.constant dense<0.000000e+00> : vector<7xf32>
    %712 = vector.multi_reduction <add>, %711, %cst_473 [1] : vector<7x16xf32> to vector<7xf32>
    %713 = vector.shape_cast %712 : vector<7xf32> to vector<7x1xf32>
    %cst_474 = arith.constant 1.600000e+01 : f32
    %714 = vector.broadcast %cst_474 : f32 to vector<7x1xf32>
    %715 = arith.divf %713, %714 : vector<7x1xf32>
    %c0_475 = arith.constant 0 : index
    %c0_476 = arith.constant 0 : index
    %716 = vector.load %arg13[%c0_475, %c0_476] : memref<7x1xf32, #tpu.memory_space<vmem>>, vector<7x1xf32>
    tpu.vector_store %arg13[%c0_475, %c0_476], %715 {strides = array<i32>} : memref<7x1xf32, #tpu.memory_space<vmem>>, vector<7x1xf32>,
    return
  }
}

</mosaic_0001>

<bundles_post_ra>
// kernel: tpu_custom_call.1
= control target key start
LH: loop header
LB: loop body
LE: loop exit
PB: predicated region body
PF: predicated region fallthrough
CT: control target
= control target key end

     0   :  { %20 = vsyncpa [#allocation5], 0  ;;  %s2670_s0 = inlined_call_operand.vmem [shape: f32[8,16], index: 0, kind: input, shape index: {}]   ;;  %s2671_s1 = inlined_call_operand.vmem [shape: f32[32,16], index: 1, kind: input, shape index: {}]   ;;  %s2672_s2 = inlined_call_operand.vmem [shape: f32[32,32], index: 2, kind: input, shape index: {}]   ;;  %s2673_s3 = inlined_call_operand.vmem [shape: f32[32,16], index: 3, kind: input, shape index: {}]   ;;  %s2674_s4 = inlined_call_operand.vmem [shape: f32[16,32], index: 4, kind: input, shape index: {}]   ;;  %s2675_s5 = inlined_call_operand.vmem [shape: f32[32,32], index: 5, kind: input, shape index: {}]   ;;  %s2676_s6 = inlined_call_operand.vmem [shape: f32[1,32], index: 6, kind: input, shape index: {}]   ;;  %s2677_s7 = inlined_call_operand.vmem [shape: f32[1,16], index: 7, kind: input, shape index: {}]   ;;  %s2678_s8 = inlined_call_operand.vmem [shape: f32[1,32], index: 8, kind: input, shape index: {}]   ;;  %s2679_s9 = inlined_call_operand.vmem [shape: f32[1,32], index: 9, kind: input, shape index: {}]   ;;  %s2680_s10 = inlined_call_operand.vmem [shape: f32[20,7,32], index: 10, kind: input, shape index: {}]   ;;  %s2681_s11 = inlined_call_operand.vmem [shape: f32[20,7,16], index: 11, kind: input, shape index: {}]   ;;  %s2682_s12 = inlined_call_operand.hbm [shape: f32[1,1], index: 12, kind: output, shape index: {0}]   ;;  %s2683_s13 = inlined_call_operand.vmem [shape: f32[7,1], index: 13, kind: output, shape index: {1}]   ;;  %s2684_s14 = inlined_call_operand.hbm [shape: f32[1,1], index: 14, kind: output, shape index: {2}]  }
   0x1   :  { %21 = vsyncpa [#allocation7], 0  ;;  %v48_v0 = vld [vmem:[%s2674_s4 + $0x8] sm:$0xff]  ;;  %v47_v1 = vld [vmem:[%s2674_s4] sm:$0xff]  ;;  %vm53_vm0 = vcmask 130048   ;;  %vm80_vm1 = vcmask 253952  }
   0x2   :  { %71 = vmatpush.msra.mxu0 %v48_v0  ;;  %v46_v2 = vld [vmem:[%s2670_s0] sm:$0xff]  ;;  %vm77_vm2 = vcmask 261120   ;;  %s1955_s24 = smov 1  }
   0x3   :  { %v79_v3 = vld [vmem:[%s2679_s9] sm:$0x1] }
   0x4   :  { %72 = vmatpush.msra.mxu0 %v47_v1  ;;  %81 = vst.msk [vmem:[#allocation3] sm:$0x1] %vm80_vm1, %v79_v3  ;;  %v82_v4 = vld [vmem:[%s2679_s9] sm:$0x1]  }
   0x5   :  { %1607 = vmatmul.msk.f32.vlgmr.msra.gmra.mxu0 %vm53_vm0, %v46_v2  ;;  %v1789_v5 = vld [vmem:[%s2678_s8] ss:$0 sm:$0xff]  ;;  %v1951_v8 = vmov %v82_v4  }
  0x82   :  { %v74_v6 = vpop.f32.mrf.mxu0 }
  0x83   :  { %v75_v7 = vadd.f32 %v1789_v5, %v74_v6 }
  0x85   :  { %78 = vst.msk [vmem:[#allocation2] sm:$0xff] %vm77_vm2, %v75_v7 }
  0x86 LB: > { %v95_v9 = vld [vmem:[%s2675_s5 + $0x18] sm:$0xff]  ;;  %v94_v10 = vld [vmem:[%s2675_s5 + $0x10] sm:$0xff]  ;;  %v93_v11 = vld [vmem:[%s2675_s5 + $0x8] sm:$0xff]  ;;  %s90_s15 = scalar_lea.vmem [#allocation2], %s1957_s24  ;;  %s121_s16 = scalar_lea.vmem [#allocation3], %s1957_s24  ;;  %s1957_s24 = sphi %s1955_s24, %s88_s24   ;;  %v1953_v8 = vphi %v1951_v8, %v1791_v8  }
  0x87   : > { %111 = vmatpush.msra.mxu0 %v95_v9  ;;  %v92_v12 = vld [vmem:[%s2675_s5] sm:$0xff]  ;;  %s88_s24 = sadd.s32 1, %s1957_s24  }
  0x88   : > { %p85_p0 = scmp.ge.s32.totalorder %s88_s24, 7  }
  0x89   : > { %112 = vmatpush.msra.mxu0 %v94_v10  ;;  %v2076_v16 = vld [vmem:[%s2671_s1 + $0x18] sm:$0xff] (%p85_p0)  ;;  %v2088_v18 = vld [vmem:[%s2672_s2 + $0x10] sm:$0xff] (%p85_p0)  ;;  %v125_v20 = vld [vmem:[%s2672_s2 + $0x8] sm:$0xff] (%p85_p0)  ;;  %v1959_v50 = vmov (%p85_p0), 0.0   ;;  %vm1453_vm4 = vcmask (%p85_p0), 129024   ;;  %vm1457_vm6 = vcmask (%p85_p0), 1046528  }
  0x8a   :  { %1611 = vmatpush.xpose.msk.msra.mxu2 (%p85_p0), %vm53_vm0, %v2076_v16  ;;  %v2083_v17 = vld [vmem:[%s2672_s2 + $0x18] sm:$0xff] (%p85_p0)  ;;  %245 = vmatpush.msra.mxu3 (%p85_p0), %v2076_v16  ;;  %v2094_v19 = vld [vmem:[%s2671_s1 + $0x10] sm:$0xff] (%p85_p0)  ;;  %v2104_v21 = vld [vmem:[%s2671_s1 + $0x8] sm:$0xff] (%p85_p0)  ;;  %v1503_v37 = vmul.f32 (%p85_p0), %v125_v20, %v125_v20  ;;  %v1504_v52 = vmul.f32 (%p85_p0), %v2088_v18, %v2088_v18  ;;  %vm1543_vm11 = vcmask (%p85_p0), 0   ;;  %s1960_s30 = smov (%p85_p0), [#allocation4]   ;;  %s1568_s18 = sshll.u32 (%p85_p0), %s2682_s12, 4  ;;  %s1569_s18 = int_to_ptr.hbm [resolvable:$true] %s1568_s18 }
  0x8b   : > { %113 = vmatpush.msra.mxu0 %v93_v11  ;;  %v124_v22 = vld [vmem:[%s2672_s2] sm:$0xff] (%p85_p0)  ;;  %v158_v26 = vld [vmem:[%s2673_s3 + $0x18] sm:$0xff] (%p85_p0)  ;;  %v157_v27 = vld [vmem:[%s2673_s3 + $0x10] sm:$0xff] (%p85_p0)  ;;  %v1505_v54 = vmul.f32 (%p85_p0), %v2083_v17, %v2083_v17  ;;  %s1961_s20 = smov (%p85_p0), [#allocation6]  }
  0x8c   : > { %v91_v13 = vld [vmem:[%s90_s15] sm:$0x1]  ;;  %246 = vmatpush.msra.mxu3 (%p85_p0), %v2094_v19  ;;  %v2133_v25 = vld [vmem:[%s2670_s0 + $0x1] sm:$0x7f] (%p85_p0)  ;;  %175 = vmatpush.msra.mxu1 (%p85_p0), %v158_v26  ;;  %v156_v28 = vld [vmem:[%s2673_s3 + $0x8] sm:$0xff] (%p85_p0)  ;;  %v1502_v31 = vmul.f32 (%p85_p0), %v124_v22, %v124_v22  ;;  %v1467_v32 = vmul.f32 (%p85_p0), %v157_v27, %v157_v27  ;;  %v1509_v41 = vsel (%p85_p0), %vm77_vm2, %v1503_v37, 0.0  ;;  %v1468_v53 = vmul.f32 (%p85_p0), %v158_v26, %v158_v26 }
  0x8d   : > { %114 = vmatpush.msra.mxu0 %v92_v12  ;;  %v2116_v23 = vld [vmem:[%s2671_s1] sm:$0xff] (%p85_p0)  ;;  %v1466_v36 = vmul.f32 (%p85_p0), %v156_v28, %v156_v28  ;;  %v1512_v55 = vsel (%p85_p0), %vm77_vm2, %v1504_v52, 0.0  ;;  %v1515_v57 = vsel (%p85_p0), %vm77_vm2, %v1505_v54, 0.0  ;;  %v1442_v5 = vsub.f32 (%p85_p0), 0.0, %v2133_v25  ;;  %s1566_s15 = sshll.u32 (%p85_p0), %s1960_s30, 4  ;;  %s1579_s21 = sshll.u32 (%p85_p0), %s1961_s20, 4  ;;  %s1567_s15 = int_to_ptr.vmem [resolvable:$true] %s1566_s15  ;;  %s1580_s21 = int_to_ptr.vmem [resolvable:$true] %s1579_s21 }
  0x8e   : > { %1608 = vmatmul.msk.f32.vlgmr.msra.gmra.mxu0 %vm77_vm2, %v1953_v8  ;;  %1612 = vmatpush.xpose.msk.msra.mxu2 (%p85_p0), %vm53_vm0, %v2094_v19  ;;  %v155_v29 = vld [vmem:[%s2673_s3] sm:$0xff] (%p85_p0)  ;;  %v1506_v34 = vsel (%p85_p0), %vm77_vm2, %v1502_v31, 0.0  ;;  %v1475_v35 = vsel (%p85_p0), %vm53_vm0, %v1467_v32, 0.0  ;;  %v1478_v56 = vsel (%p85_p0), %vm53_vm0, %v1468_v53, 0.0  ;;  %v1447_v7 = vsub.f32 (%p85_p0), 1.0, %v2133_v25 }
  0x8f   :  { %147 = vmatpush.msra.mxu0 (%p85_p0), %v2083_v17  ;;  %247 = vmatpush.msra.mxu3 (%p85_p0), %v2104_v21  ;;  %v1465_v30 = vmul.f32 (%p85_p0), %v155_v29, %v155_v29  ;;  %v1792_v38 = vld [vmem:[%s2676_s6] ss:$0 sm:$0xff] (%p85_p0)  ;;  %v1472_v40 = vsel (%p85_p0), %vm53_vm0, %v1466_v36, 0.0  ;;  %s1581_s6 = sshll.u32 (%p85_p0), %s2684_s14, 4  ;;  %s1582_s6 = int_to_ptr.hbm [resolvable:$true] %s1581_s6 }
  0x90   :  { %176 = vmatpush.msra.mxu1 (%p85_p0), %v157_v27  ;;  %1507 = vadd.xlane.f32.xlu1 (%p85_p0), %v1506_v34  ;;  %v227_v48 = vld [vmem:[%s2680_s10] sm:$0x7f] (%p85_p0) }
  0x91   :  { %148 = vmatpush.msra.mxu0 (%p85_p0), %v2088_v18  ;;  %248 = vmatpush.msra.mxu3 (%p85_p0), %v2116_v23  ;;  %v1469_v33 = vsel (%p85_p0), %vm53_vm0, %v1465_v30, 0.0  ;;  %v1793_v58 = vld [vmem:[%s2677_s7] ss:$0 sm:$0xff] (%p85_p0) }
  0x92   :  { %1613 = vmatpush.xpose.msk.msra.mxu2 (%p85_p0), %vm53_vm0, %v2104_v21  ;;  %177 = vmatpush.msra.mxu1 (%p85_p0), %v156_v28 }
  0x93   :  { %149 = vmatpush.msra.mxu0 (%p85_p0), %v125_v20  ;;  %1625 = vmatpush.xpose.msk.msrb.mxu3 (%p85_p0), %vm53_vm0, %v2076_v16  ;;  %v257_v20 = vld [vmem:[%s2681_s11] sm:$0x7f] (%p85_p0) }
  0x94   :  { %178 = vmatpush.msra.mxu1 (%p85_p0), %v155_v29  ;;  %1470 = vadd.xlane.f32.xlu0 (%p85_p0), %v1469_v33 }
  0x95   :  { %150 = vmatpush.msra.mxu0 (%p85_p0), %v124_v22  ;;  %1476 = vadd.xlane.f32.xlu2 (%p85_p0), %v1475_v35 }
  0x96   :  { %1614 = vmatpush.xpose.msk.msra.mxu2 (%p85_p0), %vm53_vm0, %v2116_v23  ;;  %306 = vmatpush.msrb.mxu1 (%p85_p0), %v2076_v16 }
  0x97   :  { %1617 = vmatpush.xpose.msk.msrb.mxu0 (%p85_p0), %vm53_vm0, %v2076_v16  ;;  %1626 = vmatpush.xpose.msk.msrb.mxu3 (%p85_p0), %vm53_vm0, %v2094_v19 }
  0x98   :  { %307 = vmatpush.msrb.mxu1 (%p85_p0), %v2094_v19  ;;  %1510 = vadd.xlane.f32.xlu1 (%p85_p0), %v1509_v41 }
  0x99   :  { %1615 = vmatmul.msk.f32.vlgmr.msra.gmra.mxu2 (%p85_p0), %vm53_vm0, %v2133_v25 }
  0x9a   :  { %1633 = vmatpush.xpose.msk.msrb.mxu2 (%p85_p0), %vm53_vm0, %v2076_v16  ;;  %308 = vmatpush.msrb.mxu1 (%p85_p0), %v2104_v21 }
  0x9b   :  { %1618 = vmatpush.xpose.msk.msrb.mxu0 (%p85_p0), %vm53_vm0, %v2094_v19  ;;  %1627 = vmatpush.xpose.msk.msrb.mxu3 (%p85_p0), %vm53_vm0, %v2104_v21 }
  0x9c   :  { %309 = vmatpush.msrb.mxu1 (%p85_p0), %v2116_v23  ;;  %1473 = vadd.xlane.f32.xlu0 (%p85_p0), %v1472_v40 }
  0x9d   :  { %1513 = vadd.xlane.f32.xlu2 (%p85_p0), %v1512_v55 }
  0x9e   :  { %1634 = vmatpush.xpose.msk.msrb.mxu2 (%p85_p0), %vm53_vm0, %v2094_v19 }
  0x9f   :  { %1619 = vmatpush.xpose.msk.msrb.mxu0 (%p85_p0), %vm53_vm0, %v2104_v21  ;;  %1628 = vmatpush.xpose.msk.msrb.mxu3 (%p85_p0), %vm53_vm0, %v2116_v23 }
  0xa0   :  { %1516 = vadd.xlane.f32.xlu1 (%p85_p0), %v1515_v57 }
  0xa2   :  { %1635 = vmatpush.xpose.msk.msrb.mxu2 (%p85_p0), %vm53_vm0, %v2104_v21 }
  0xa3   :  { %1620 = vmatpush.xpose.msk.msrb.mxu0 (%p85_p0), %vm53_vm0, %v2116_v23 }
  0xa4   :  { %1479 = vadd.xlane.f32.xlu0 (%p85_p0), %v1478_v56 }
  0xa6   :  { %1636 = vmatpush.xpose.msk.msrb.mxu2 (%p85_p0), %vm53_vm0, %v2116_v23 }
  0xaa   :  { %554 = vmatpush.msra.mxu2 (%p85_p0), %v2076_v16 }
  0xac   :  { %555 = vmatpush.msra.mxu2 (%p85_p0), %v2094_v19 }
  0xae   :  { %556 = vmatpush.msra.mxu2 (%p85_p0), %v2104_v21 }
  0xb0   :  { %557 = vmatpush.msra.mxu2 (%p85_p0), %v2116_v23 }
 0x103   :  { %v1508_v26 = vpop.xlane.xlu1 (%p85_p0), %1507 }
 0x107   :  { %v1471_v25 = vpop.xlane.xlu0 (%p85_p0), %1470 }
 0x108   :  { %v1477_v27 = vpop.xlane.xlu2 (%p85_p0), %1476 }
 0x10b   : > { %v116_v14 = vpop.f32.mrf.mxu0  ;;  %v1511_v29 = vpop.xlane.xlu1 (%p85_p0), %1510 }
 0x10c   : > { %v119_v15 = vadd.f32 %v116_v14, %v91_v13  ;;  %v1518_v31 = vadd.f32 (%p85_p0), %v1511_v29, %v1508_v26 }
 0x10e   : > { %1790 = vtanh.f32 %v119_v15 }
 0x10f   :  { %v1474_v28 = vpop.xlane.xlu0 (%p85_p0), %1473 }
 0x110   :  { %v1481_v30 = vadd.f32 (%p85_p0), %v1474_v28, %v1471_v25  ;;  %v1514_v32 = vpop.xlane.xlu2 (%p85_p0), %1513 }
 0x111   :  { %87 = sbr.rel (!%p85_p0) target bundleno = 134 (0x86), region = 131  ;;  %v1519_v34 = vadd.f32 (%p85_p0), %v1518_v31, %v1514_v32  ;;  %v1622_v31 = vld [vmem:[%s2680_s10 + $0x8] sm:$0x7f] (%p85_p0) }
 0x112   :  { %v1482_v33 = vadd.f32 (%p85_p0), %v1481_v30, %v1477_v27 }
 0x113   :  { %v1517_v36 = vpop.xlane.xlu1 (%p85_p0), %1516 }
 0x114   : > { %v1791_v8 = vpop.eup %1790  }
 0x115   : > { %122 = vst.msk [vmem:[%s121_s16] sm:$0x1] %vm80_vm1, %v1791_v8 }
 0x117   :  { %v1480_v35 = vpop.xlane.xlu0 %1479 }
 0x118   :  { %v1483_v37 = vadd.f32 %v1482_v33, %v1480_v35 }
 0x11c   :  { %v123_v24 = vld [vmem:[#allocation3] sm:$0x7f]  ;;  %v220_v43 = vpop.f32.mrf.mxu2 }
 0x11d   :  { %1609 = vmatmul.msk.f32.vlgmr.msra.gmra.mxu0 %vm77_vm2, %v123_v24  ;;  %1610 = vmatmul.msk.f32.vlgmr.msra.gmra.mxu1 %vm77_vm2, %v123_v24 }
 0x11e   :  { %430 = vmatpush.msra.mxu0 %v2076_v16  ;;  %368 = vmatpush.msra.mxu1 %v2076_v16 }
 0x120   :  { %431 = vmatpush.msra.mxu0 %v2094_v19  ;;  %369 = vmatpush.msra.mxu1 %v2094_v19 }
 0x122   :  { %432 = vmatpush.msra.mxu0 %v2104_v21  ;;  %370 = vmatpush.msra.mxu1 %v2104_v21 }
 0x124   :  { %433 = vmatpush.msra.mxu0 %v2116_v23  ;;  %371 = vmatpush.msra.mxu1 %v2116_v23 }
 0x19a   :  { %v152_v39 = vpop.f32.mrf.mxu0  ;;  %v180_v59 = vpop.f32.mrf.mxu1 }
 0x19b   :  { %v2190_v42 = vadd.f32 %v1792_v38, %v152_v39  ;;  %v2214_v60 = vadd.f32 %v1793_v58, %v180_v59  ;;  %v1520_v38 = vadd.f32 %v1519_v34, %v1517_v36  ;;  %v1484_v39 = vrot.slane %v1483_v37, 4 }
 0x19d   :  { %v221_v44 = vadd.f32 %v220_v43, %v2190_v42  ;;  %v1438_v61 = vmul.f32 0.5, %v2214_v60  ;;  %v1521_v40 = vrot.slane %v1520_v38, 4  ;;  %v1485_v41 = vadd.f32 %v1484_v39, %v1483_v37  ;;  %v1624_v39 = vld [vmem:[%s2681_s11 + $0x8] sm:$0x7f] }
 0x19f   :  { %v223_v45 = vmul.f32 0.5, %v221_v44  ;;  %v1522_v43 = vadd.f32 %v1521_v40, %v1520_v38  ;;  %v1486_v44 = vrot.slane %v1485_v41, 2 }
 0x1a1   :  { %1794 = vtanh.f32 %v223_v45  ;;  %v1523_v45 = vrot.slane %v1522_v43, 2 }
 0x1a2   :  { %1796 = vtanh.f32 %v1438_v61 }
 0x1a7   :  { %v1795_v46 = vpop.eup %1794 }
 0x1a8   :  { %v225_v47 = vmul.f32 0.5, %v1795_v46  ;;  %v1797_v62 = vpop.eup %1796  ;;  %v1487_v46 = vadd.f32 %v1486_v44, %v1485_v41 }
 0x1a9   :  { %v1440_v63 = vmul.f32 0.5, %v1797_v62 }
 0x1aa   :  { %v226_v49 = vadd.f32 0.5, %v225_v47  ;;  %v1524_v47 = vadd.f32 %v1523_v45, %v1522_v43 }
 0x1ab   :  { %v1441_v0 = vadd.f32 0.5, %v1440_v63 }
 0x1ac   :  { %vm228_vm3 = vcmp.gt.f32.partialorder %v226_v49, %v227_v48  ;;  %v1488_v48 = vrot.slane %v1487_v46, 1  ;;  %v1525_v49 = vrot.slane %v1524_v47, 1 }
 0x1ad   :  { %v229_v51 = vsel %vm228_vm3, 1.0, %v1959_v50  ;;  %v1443_v1 = vadd.f32 1e-06, %v1441_v0  ;;  %v1448_v2 = vsub.f32 1.000001, %v1441_v0 }
 0x1ae   :  { %1616 = vmatmul.msk.f32.vlgmr.msra.gmra.mxu3 %vm77_vm2, %v229_v51  ;;  %v1489_v51 = vadd.f32 %v1488_v48, %v1487_v46  ;;  %v1526_v52 = vadd.f32 %v1525_v49, %v1524_v47  ;;  %v1630_v48 = vld [vmem:[%s2680_s10 + $0x10] sm:$0x7f] }
 0x1af   :  { %492 = vmatpush.msra.mxu3 %v2076_v16  ;;  %1798 = vlog2.f32 %v1443_v1 }
 0x1b0   :  { %1800 = vlog2.f32 %v1448_v2  ;;  %vm1497_vm7 = vcmp.eq.f32.partialorder %v1489_v51, inf  ;;  %vm1534_vm8 = vcmp.eq.f32.partialorder %v1526_v52, inf  ;;  %vm1499_vm9 = vcmp.eq.f32.partialorder %v1489_v51, 0.0 }
 0x1b1   :  { %493 = vmatpush.msra.mxu3 %v2094_v19  ;;  %vm1536_vm10 = vcmp.eq.f32.partialorder %v1526_v52, 0.0 }
 0x1b3   :  { %494 = vmatpush.msra.mxu3 %v2104_v21 }
 0x1b5   :  { %495 = vmatpush.msra.mxu3 %v2116_v23  ;;  %v1799_v3 = vpop.eup %1798 }
 0x1b6   :  { %v1801_v4 = vpop.eup %1800  ;;  %v1445_v6 = vmul.f32 0.6931472, %v1799_v3 }
 0x1b7   :  { %v1450_v8 = vmul.f32 0.6931472, %v1801_v4 }
 0x1b8   :  { %v1446_v9 = vmul.f32 %v1445_v6, %v1442_v5 }
 0x1b9   :  { %v1451_v10 = vmul.f32 %v1450_v8, %v1447_v7 }
 0x1bb   :  { %v1452_v11 = vsub.f32 %v1446_v9, %v1451_v10  ;;  %v1500_v10 = vand.u32 2147483648, %v1489_v51 }
 0x1bd   :  { %v1454_v12 = vsel %vm1453_vm4, %v1452_v11, 0.0 }
 0x1be   :  { %1455 = vadd.xlane.f32.xlu2 %v1454_v12 }
 0x231   :  { %v250_v13 = vpop.f32.mrf.mxu3  ;;  %v1456_v59 = vpop.xlane.xlu2 %1455 }
 0x232   :  { %v251_v14 = vadd.f32 %v250_v13, %v2214_v60  ;;  %v1458_v61 = vsel %vm1457_vm6, %v1456_v59, 0.0 }
 0x233   :  { %v1459_v0 = vrot.slane %v1458_v61, 4 }
 0x234   :  { %v253_v15 = vmul.f32 0.5, %v251_v14 }
 0x235   :  { %v1460_v3 = vadd.f32 %v1459_v0, %v1458_v61 }
 0x236   :  { %1802 = vtanh.f32 %v253_v15  ;;  %v1537_v15 = vand.u32 2147483648, %v1526_v52 }
 0x237   :  { %1804 = vrsqrt.f32 %v1489_v51  ;;  %v1461_v6 = vrot.slane %v1460_v3, 2 }
 0x238   :  { %1806 = vrsqrt.f32 %v1526_v52 }
 0x239   :  { %v1462_v9 = vadd.f32 %v1461_v6, %v1460_v3 }
 0x23b   :  { %v1463_v13 = vrot.slane %v1462_v9, 1 }
 0x23c   :  { %v1803_v17 = vpop.eup %1802 }
 0x23d   :  { %v255_v18 = vmul.f32 0.5, %v1803_v17  ;;  %v1805_v53 = vpop.eup %1804  ;;  %v1464_v17 = vadd.f32 %v1463_v13, %v1462_v9 }
 0x23e   :  { %v1807_v54 = vpop.eup %1806  ;;  %v1491_v55 = vmul.f32 %v1805_v53, %v1489_v51 }
 0x23f   :  { %v256_v22 = vadd.f32 0.5, %v255_v18  ;;  %v1528_v56 = vmul.f32 %v1807_v54, %v1526_v52 }
 0x240   :  { %v1492_v57 = vmul.f32 %v1805_v53, %v1491_v55 }
 0x241   :  { %vm258_vm5 = vcmp.gt.f32.partialorder %v256_v22, %v257_v20  ;;  %v1529_v58 = vmul.f32 %v1807_v54, %v1528_v56  ;;  %v1541_v22 = vmul.f32 0.125, %v1464_v17 }
 0x242   :  { %v259_v24 = vsel %vm258_vm5, 1.0, %v1959_v50  ;;  %v1493_v62 = vmul.f32 0.5, %v1492_v57  ;;  %v1632_v57 = vld [vmem:[%s2681_s11 + $0x10] sm:$0x7f] }
 0x243   :  { %1621 = vmatmul.msk.f32.vlgmr.msrb.gmra.mxu0 %vm53_vm0, %v259_v24  ;;  %v1530_v63 = vmul.f32 0.5, %v1529_v58 }
 0x244   :  { %1649 = vmatpush.xpose.msk.msrb.mxu0 %vm53_vm0, %v2076_v16  ;;  %v1494_v1 = vsub.f32 1.5, %v1493_v62 }
 0x245   :  { %v1531_v2 = vsub.f32 1.5, %v1530_v63 }
 0x246   :  { %v1495_v4 = vmul.f32 %v1805_v53, %v1494_v1 }
 0x247   :  { %v1532_v5 = vmul.f32 %v1807_v54, %v1531_v2  ;;  %v1638_v2 = vld [vmem:[%s2680_s10 + $0x18] sm:$0x7f] }
 0x248   :  { %1650 = vmatpush.xpose.msk.msrb.mxu0 %vm53_vm0, %v2094_v19  ;;  %v1496_v7 = vmul.f32 %v1495_v4, %v1489_v51 }
 0x249   :  { %v1533_v8 = vmul.f32 %v1532_v5, %v1526_v52 }
 0x24a   :  { %v1498_v11 = vsel %vm1497_vm7, %v1489_v51, %v1496_v7 }
 0x24b   :  { %v1535_v12 = vsel %vm1534_vm8, %v1526_v52, %v1533_v8  ;;  %v1501_v14 = vsel %vm1499_vm9, %v1500_v10, %v1498_v11  ;;  %v1640_v10 = vld [vmem:[%s2681_s11 + $0x18] sm:$0x7f] }
 0x24c   :  { %1651 = vmatpush.xpose.msk.msrb.mxu0 %vm53_vm0, %v2104_v21  ;;  %v1538_v18 = vsel %vm1536_vm10, %v1537_v15, %v1535_v12 }
 0x24d   :  { %v1539_v20 = vadd.f32 %v1538_v18, %v1501_v14 }
 0x24f   :  { %v1540_v24 = vmul.f32 0.2, %v1539_v20  ;;  %v1646_v20 = vld [vmem:[%s2680_s10 + $0x20] sm:$0x7f] }
 0x250   :  { %1652 = vmatpush.xpose.msk.msrb.mxu0 %vm53_vm0, %v2116_v23 }
 0x251   :  { %v1542_v25 = vadd.f32 %v1541_v22, %v1540_v24  ;;  %1545 = vst.msk [vmem:[#allocation6] sm:$0x1] %vm1543_vm11, %v1540_v24 }
 0x252   :  { %1584 = dma.vmem_to_hbm [thread:$0]  %s1580_s21, 16, %s1582_s6, [#allocation7]  }
 0x253   :  { %1544 = vst.msk [vmem:[#allocation4] sm:$0x1] %vm1543_vm11, %v1542_v25 }
 0x254   :  { %1571 = dma.vmem_to_hbm [thread:$0]  %s1567_s15, 16, %s1569_s18, [#allocation5]  }
 0x2c0   :  { %v280_v26 = vpop.f32.mrf.mxu0 }
 0x2c1   :  { %v281_v27 = vadd.f32 %v280_v26, %v2190_v42 }
 0x2c3   :  { %v283_v28 = vmul.f32 0.5, %v281_v27 }
 0x2c5   :  { %1808 = vtanh.f32 %v283_v28 }
 0x2cb   :  { %v1809_v29 = vpop.eup %1808 }
 0x2cc   :  { %v285_v30 = vmul.f32 0.5, %v1809_v29 }
 0x2ce   :  { %v286_v32 = vadd.f32 0.5, %v285_v30  ;;  %v1648_v30 = vld [vmem:[%s2681_s11 + $0x20] sm:$0x7f] }
 0x2d0   :  { %vm289_vm12 = vcmp.gt.f32.partialorder %v286_v32, %v1622_v31 }
 0x2d1   :  { %v290_v33 = vsel %vm289_vm12, 1.0, %v1959_v50 }
 0x2d2   :  { %1623 = vmatmul.msk.f32.vlgmr.msrb.gmra.mxu1 %vm77_vm2, %v290_v33 }
 0x2d3   :  { %1641 = vmatpush.xpose.msk.msrb.mxu1 %vm53_vm0, %v2076_v16 }
 0x2d7   :  { %1642 = vmatpush.xpose.msk.msrb.mxu1 %vm53_vm0, %v2094_v19 }
 0x2db   :  { %1643 = vmatpush.xpose.msk.msrb.mxu1 %vm53_vm0, %v2104_v21 }
 0x2df   :  { %1644 = vmatpush.xpose.msk.msrb.mxu1 %vm53_vm0, %v2116_v23 }
 0x34f   :  { %v311_v34 = vpop.f32.mrf.mxu1 }
 0x350   :  { %v312_v35 = vadd.f32 %v311_v34, %v2214_v60 }
 0x352   :  { %v314_v36 = vmul.f32 0.5, %v312_v35 }
 0x354   :  { %1810 = vtanh.f32 %v314_v36 }
 0x35a   :  { %v1811_v37 = vpop.eup %1810 }
 0x35b   :  { %v316_v38 = vmul.f32 0.5, %v1811_v37 }
 0x35d   :  { %v317_v40 = vadd.f32 0.5, %v316_v38  ;;  %v1654_v38 = vld [vmem:[%s2680_s10 + $0x28] sm:$0x7f] }
 0x35f   :  { %vm320_vm13 = vcmp.gt.f32.partialorder %v317_v40, %v1624_v39 }
 0x360   :  { %v321_v41 = vsel %vm320_vm13, 1.0, %v1959_v50 }
 0x361   :  { %1629 = vmatmul.msk.f32.vlgmr.msrb.gmra.mxu3 %vm53_vm0, %v321_v41 }
 0x362   :  { %1657 = vmatpush.xpose.msk.msrb.mxu3 %vm53_vm0, %v2076_v16 }
 0x366   :  { %1658 = vmatpush.xpose.msk.msrb.mxu3 %vm53_vm0, %v2094_v19 }
 0x36a   :  { %1659 = vmatpush.xpose.msk.msrb.mxu3 %vm53_vm0, %v2104_v21 }
 0x36e   :  { %1660 = vmatpush.xpose.msk.msrb.mxu3 %vm53_vm0, %v2116_v23 }
 0x3e4   :  { %v342_v43 = vpop.f32.mrf.mxu3 }
 0x3e5   :  { %v343_v44 = vadd.f32 %v342_v43, %v2190_v42 }
 0x3e7   :  { %v345_v45 = vmul.f32 0.5, %v343_v44 }
 0x3e9   :  { %1812 = vtanh.f32 %v345_v45 }
 0x3ef   :  { %v1813_v46 = vpop.eup %1812 }
 0x3f0   :  { %v347_v47 = vmul.f32 0.5, %v1813_v46 }
 0x3f2   :  { %v348_v49 = vadd.f32 0.5, %v347_v47  ;;  %v1656_v47 = vld [vmem:[%s2681_s11 + $0x28] sm:$0x7f] }
 0x3f4   :  { %vm351_vm14 = vcmp.gt.f32.partialorder %v348_v49, %v1630_v48 }
 0x3f5   :  { %v352_v51 = vsel %vm351_vm14, 1.0, %v1959_v50 }
 0x3f6   :  { %1631 = vmatmul.msk.f32.vlgmr.msra.gmra.mxu1 %vm77_vm2, %v352_v51 }
 0x3f7   :  { %616 = vmatpush.msra.mxu1 %v2076_v16 }
 0x3f9   :  { %617 = vmatpush.msra.mxu1 %v2094_v19 }
 0x3fb   :  { %618 = vmatpush.msra.mxu1 %v2104_v21 }
 0x3fd   :  { %619 = vmatpush.msra.mxu1 %v2116_v23 }
 0x473   :  { %v373_v52 = vpop.f32.mrf.mxu1 }
 0x474   :  { %v374_v53 = vadd.f32 %v373_v52, %v2214_v60 }
 0x476   :  { %v376_v54 = vmul.f32 0.5, %v374_v53 }
 0x478   :  { %1814 = vtanh.f32 %v376_v54 }
 0x47e   :  { %v1815_v55 = vpop.eup %1814 }
 0x47f   :  { %v378_v56 = vmul.f32 0.5, %v1815_v55 }
 0x481   :  { %v379_v58 = vadd.f32 0.5, %v378_v56  ;;  %v1662_v56 = vld [vmem:[%s2680_s10 + $0x30] sm:$0x7f] }
 0x483   :  { %vm382_vm15 = vcmp.gt.f32.partialorder %v379_v58, %v1632_v57 }
 0x484   :  { %v383_v59 = vsel %vm382_vm15, 1.0, %v1959_v50 }
 0x485   :  { %1637 = vmatmul.msk.f32.vlgmr.msrb.gmra.mxu2 %vm53_vm0, %v383_v59 }
 0x486   :  { %1665 = vmatpush.xpose.msk.msrb.mxu2 %vm53_vm0, %v2076_v16 }
 0x48a   :  { %1666 = vmatpush.xpose.msk.msrb.mxu2 %vm53_vm0, %v2094_v19 }
 0x48e   :  { %1667 = vmatpush.xpose.msk.msrb.mxu2 %vm53_vm0, %v2104_v21 }
 0x492   :  { %1668 = vmatpush.xpose.msk.msrb.mxu2 %vm53_vm0, %v2116_v23 }
 0x508   :  { %v404_v61 = vpop.f32.mrf.mxu2 }
 0x509   :  { %v405_v62 = vadd.f32 %v404_v61, %v2190_v42 }
 0x50b   :  { %v407_v63 = vmul.f32 0.5, %v405_v62 }
 0x50d   :  { %1816 = vtanh.f32 %v407_v63 }
 0x513   :  { %v1817_v0 = vpop.eup %1816 }
 0x514   :  { %v409_v1 = vmul.f32 0.5, %v1817_v0 }
 0x516   :  { %v410_v3 = vadd.f32 0.5, %v409_v1  ;;  %v1664_v1 = vld [vmem:[%s2681_s11 + $0x30] sm:$0x7f] }
 0x518   :  { %vm413_vm1 = vcmp.gt.f32.partialorder %v410_v3, %v1638_v2 }
 0x519   :  { %v414_v4 = vsel %vm413_vm1, 1.0, %v1959_v50 }
 0x51a   :  { %1639 = vmatmul.msk.f32.vlgmr.msra.gmra.mxu0 %vm77_vm2, %v414_v4 }
 0x51b   :  { %678 = vmatpush.msra.mxu0 %v2076_v16 }
 0x51d   :  { %679 = vmatpush.msra.mxu0 %v2094_v19 }
 0x51f   :  { %680 = vmatpush.msra.mxu0 %v2104_v21 }
 0x521   :  { %681 = vmatpush.msra.mxu0 %v2116_v23 }
 0x597   :  { %v435_v5 = vpop.f32.mrf.mxu0 }
 0x598   :  { %v436_v6 = vadd.f32 %v435_v5, %v2214_v60 }
 0x59a   :  { %v438_v7 = vmul.f32 0.5, %v436_v6 }
 0x59c   :  { %1818 = vtanh.f32 %v438_v7 }
 0x5a2   :  { %v1819_v8 = vpop.eup %1818 }
 0x5a3   :  { %v440_v9 = vmul.f32 0.5, %v1819_v8 }
 0x5a5   :  { %v441_v11 = vadd.f32 0.5, %v440_v9  ;;  %v1670_v9 = vld [vmem:[%s2680_s10 + $0x38] sm:$0x7f] }
 0x5a7   :  { %vm444_vm3 = vcmp.gt.f32.partialorder %v441_v11, %v1640_v10 }
 0x5a8   :  { %v445_v12 = vsel %vm444_vm3, 1.0, %v1959_v50 }
 0x5a9   :  { %1645 = vmatmul.msk.f32.vlgmr.msrb.gmra.mxu1 %vm53_vm0, %v445_v12 }
 0x5aa   :  { %1673 = vmatpush.xpose.msk.msrb.mxu1 %vm53_vm0, %v2076_v16 }
 0x5ae   :  { %1674 = vmatpush.xpose.msk.msrb.mxu1 %vm53_vm0, %v2094_v19 }
 0x5b2   :  { %1675 = vmatpush.xpose.msk.msrb.mxu1 %vm53_vm0, %v2104_v21 }
 0x5b6   :  { %1676 = vmatpush.xpose.msk.msrb.mxu1 %vm53_vm0, %v2116_v23 }
 0x626   :  { %v466_v13 = vpop.f32.mrf.mxu1 }
 0x627   :  { %v467_v14 = vadd.f32 %v466_v13, %v2190_v42 }
 0x629   :  { %v469_v15 = vmul.f32 0.5, %v467_v14 }
 0x62b   :  { %1820 = vtanh.f32 %v469_v15 }
 0x631   :  { %v1821_v17 = vpop.eup %1820 }
 0x632   :  { %v471_v18 = vmul.f32 0.5, %v1821_v17 }
 0x634   :  { %v472_v22 = vadd.f32 0.5, %v471_v18  ;;  %v1672_v18 = vld [vmem:[%s2681_s11 + $0x38] sm:$0x7f] }
 0x636   :  { %vm475_vm5 = vcmp.gt.f32.partialorder %v472_v22, %v1646_v20 }
 0x637   :  { %v476_v24 = vsel %vm475_vm5, 1.0, %v1959_v50 }
 0x638   :  { %1647 = vmatmul.msk.f32.vlgmr.msra.gmra.mxu3 %vm77_vm2, %v476_v24 }
 0x639   :  { %740 = vmatpush.msra.mxu3 %v2076_v16 }
 0x63b   :  { %741 = vmatpush.msra.mxu3 %v2094_v19 }
 0x63d   :  { %742 = vmatpush.msra.mxu3 %v2104_v21 }
 0x63f   :  { %743 = vmatpush.msra.mxu3 %v2116_v23 }
 0x6bb   :  { %v497_v25 = vpop.f32.mrf.mxu3 }
 0x6bc   :  { %v498_v26 = vadd.f32 %v497_v25, %v2214_v60 }
 0x6be   :  { %v500_v27 = vmul.f32 0.5, %v498_v26 }
 0x6c0   :  { %1822 = vtanh.f32 %v500_v27 }
 0x6c6   :  { %v1823_v28 = vpop.eup %1822 }
 0x6c7   :  { %v502_v29 = vmul.f32 0.5, %v1823_v28 }
 0x6c9   :  { %v503_v31 = vadd.f32 0.5, %v502_v29  ;;  %v1678_v29 = vld [vmem:[%s2680_s10 + $0x40] sm:$0x7f] }
 0x6cb   :  { %vm506_vm6 = vcmp.gt.f32.partialorder %v503_v31, %v1648_v30 }
 0x6cc   :  { %v507_v32 = vsel %vm506_vm6, 1.0, %v1959_v50 }
 0x6cd   :  { %1653 = vmatmul.msk.f32.vlgmr.msrb.gmra.mxu0 %vm53_vm0, %v507_v32 }
 0x6ce   :  { %1681 = vmatpush.xpose.msk.msrb.mxu0 %vm53_vm0, %v2076_v16 }
 0x6d2   :  { %1682 = vmatpush.xpose.msk.msrb.mxu0 %vm53_vm0, %v2094_v19 }
 0x6d6   :  { %1683 = vmatpush.xpose.msk.msrb.mxu0 %vm53_vm0, %v2104_v21 }
 0x6da   :  { %1684 = vmatpush.xpose.msk.msrb.mxu0 %vm53_vm0, %v2116_v23 }
 0x74a   :  { %v528_v33 = vpop.f32.mrf.mxu0 }
 0x74b   :  { %v529_v34 = vadd.f32 %v528_v33, %v2190_v42 }
 0x74d   :  { %v531_v35 = vmul.f32 0.5, %v529_v34 }
 0x74f   :  { %1824 = vtanh.f32 %v531_v35 }
 0x755   :  { %v1825_v36 = vpop.eup %1824 }
 0x756   :  { %v533_v37 = vmul.f32 0.5, %v1825_v36 }
 0x758   :  { %v534_v39 = vadd.f32 0.5, %v533_v37  ;;  %v1680_v37 = vld [vmem:[%s2681_s11 + $0x40] sm:$0x7f] }
 0x75a   :  { %vm537_vm7 = vcmp.gt.f32.partialorder %v534_v39, %v1654_v38 }
 0x75b   :  { %v538_v40 = vsel %vm537_vm7, 1.0, %v1959_v50 }
 0x75c   :  { %1655 = vmatmul.msk.f32.vlgmr.msra.gmra.mxu2 %vm77_vm2, %v538_v40 }
 0x75d   :  { %802 = vmatpush.msra.mxu2 %v2076_v16 }
 0x75f   :  { %803 = vmatpush.msra.mxu2 %v2094_v19 }
 0x761   :  { %804 = vmatpush.msra.mxu2 %v2104_v21 }
 0x763   :  { %805 = vmatpush.msra.mxu2 %v2116_v23 }
 0x7df   :  { %v559_v41 = vpop.f32.mrf.mxu2 }
 0x7e0   :  { %v560_v43 = vadd.f32 %v559_v41, %v2214_v60 }
 0x7e2   :  { %v562_v44 = vmul.f32 0.5, %v560_v43 }
 0x7e4   :  { %1826 = vtanh.f32 %v562_v44 }
 0x7ea   :  { %v1827_v45 = vpop.eup %1826 }
 0x7eb   :  { %v564_v46 = vmul.f32 0.5, %v1827_v45 }
 0x7ed   :  { %v565_v48 = vadd.f32 0.5, %v564_v46  ;;  %v1686_v46 = vld [vmem:[%s2680_s10 + $0x48] sm:$0x7f] }
 0x7ef   :  { %vm568_vm8 = vcmp.gt.f32.partialorder %v565_v48, %v1656_v47 }
 0x7f0   :  { %v569_v49 = vsel %vm568_vm8, 1.0, %v1959_v50 }
 0x7f1   :  { %1661 = vmatmul.msk.f32.vlgmr.msrb.gmra.mxu3 %vm53_vm0, %v569_v49 }
 0x7f2   :  { %1689 = vmatpush.xpose.msk.msrb.mxu3 %vm53_vm0, %v2076_v16 }
 0x7f6   :  { %1690 = vmatpush.xpose.msk.msrb.mxu3 %vm53_vm0, %v2094_v19 }
 0x7fa   :  { %1691 = vmatpush.xpose.msk.msrb.mxu3 %vm53_vm0, %v2104_v21 }
 0x7fe   :  { %1692 = vmatpush.xpose.msk.msrb.mxu3 %vm53_vm0, %v2116_v23 }
 0x874   :  { %v590_v51 = vpop.f32.mrf.mxu3 }
 0x875   :  { %v591_v52 = vadd.f32 %v590_v51, %v2190_v42 }
 0x877   :  { %v593_v53 = vmul.f32 0.5, %v591_v52 }
 0x879   :  { %1828 = vtanh.f32 %v593_v53 }
 0x87f   :  { %v1829_v54 = vpop.eup %1828 }
 0x880   :  { %v595_v55 = vmul.f32 0.5, %v1829_v54 }
 0x882   :  { %v596_v57 = vadd.f32 0.5, %v595_v55  ;;  %v1688_v55 = vld [vmem:[%s2681_s11 + $0x48] sm:$0x7f] }
 0x884   :  { %vm599_vm9 = vcmp.gt.f32.partialorder %v596_v57, %v1662_v56 }
 0x885   :  { %v600_v58 = vsel %vm599_vm9, 1.0, %v1959_v50 }
 0x886   :  { %1663 = vmatmul.msk.f32.vlgmr.msra.gmra.mxu1 %vm77_vm2, %v600_v58 }
 0x887   :  { %864 = vmatpush.msra.mxu1 %v2076_v16 }
 0x889   :  { %865 = vmatpush.msra.mxu1 %v2094_v19 }
 0x88b   :  { %866 = vmatpush.msra.mxu1 %v2104_v21 }
 0x88d   :  { %867 = vmatpush.msra.mxu1 %v2116_v23 }
 0x903   :  { %v621_v59 = vpop.f32.mrf.mxu1 }
 0x904   :  { %v622_v61 = vadd.f32 %v621_v59, %v2214_v60 }
 0x906   :  { %v624_v62 = vmul.f32 0.5, %v622_v61 }
 0x908   :  { %1830 = vtanh.f32 %v624_v62 }
 0x90e   :  { %v1831_v63 = vpop.eup %1830 }
 0x90f   :  { %v626_v0 = vmul.f32 0.5, %v1831_v63 }
 0x911   :  { %v627_v2 = vadd.f32 0.5, %v626_v0  ;;  %v1694_v0 = vld [vmem:[%s2680_s10 + $0x50] sm:$0x7f] }
 0x913   :  { %vm630_vm10 = vcmp.gt.f32.partialorder %v627_v2, %v1664_v1 }
 0x914   :  { %v631_v3 = vsel %vm630_vm10, 1.0, %v1959_v50 }
 0x915   :  { %1669 = vmatmul.msk.f32.vlgmr.msrb.gmra.mxu2 %vm53_vm0, %v631_v3 }
 0x916   :  { %1697 = vmatpush.xpose.msk.msrb.mxu2 %vm53_vm0, %v2076_v16 }
 0x91a   :  { %1698 = vmatpush.xpose.msk.msrb.mxu2 %vm53_vm0, %v2094_v19 }
 0x91e   :  { %1699 = vmatpush.xpose.msk.msrb.mxu2 %vm53_vm0, %v2104_v21 }
 0x922   :  { %1700 = vmatpush.xpose.msk.msrb.mxu2 %vm53_vm0, %v2116_v23 }
 0x998   :  { %v652_v4 = vpop.f32.mrf.mxu2 }
 0x999   :  { %v653_v5 = vadd.f32 %v652_v4, %v2190_v42 }
 0x99b   :  { %v655_v6 = vmul.f32 0.5, %v653_v5 }
 0x99d   :  { %1832 = vtanh.f32 %v655_v6 }
 0x9a3   :  { %v1833_v7 = vpop.eup %1832 }
 0x9a4   :  { %v657_v8 = vmul.f32 0.5, %v1833_v7 }
 0x9a6   :  { %v658_v10 = vadd.f32 0.5, %v657_v8  ;;  %v1696_v8 = vld [vmem:[%s2681_s11 + $0x50] sm:$0x7f] }
 0x9a8   :  { %vm661_vm11 = vcmp.gt.f32.partialorder %v658_v10, %v1670_v9 }
 0x9a9   :  { %v662_v11 = vsel %vm661_vm11, 1.0, %v1959_v50 }
 0x9aa   :  { %1671 = vmatmul.msk.f32.vlgmr.msra.gmra.mxu0 %vm77_vm2, %v662_v11 }
 0x9ab   :  { %926 = vmatpush.msra.mxu0 %v2076_v16 }
 0x9ad   :  { %927 = vmatpush.msra.mxu0 %v2094_v19 }
 0x9af   :  { %928 = vmatpush.msra.mxu0 %v2104_v21 }
 0x9b1   :  { %929 = vmatpush.msra.mxu0 %v2116_v23 }
 0xa27   :  { %v683_v12 = vpop.f32.mrf.mxu0 }
 0xa28   :  { %v684_v13 = vadd.f32 %v683_v12, %v2214_v60 }
 0xa2a   :  { %v686_v14 = vmul.f32 0.5, %v684_v13 }
 0xa2c   :  { %1834 = vtanh.f32 %v686_v14 }
 0xa32   :  { %v1835_v15 = vpop.eup %1834 }
 0xa33   :  { %v688_v17 = vmul.f32 0.5, %v1835_v15 }
 0xa35   :  { %v689_v20 = vadd.f32 0.5, %v688_v17 }
 0xa37   :  { %vm692_vm12 = vcmp.gt.f32.partialorder %v689_v20, %v1672_v18  ;;  %v2493_v18 = vld [vmem:[%s2671_s1 + $0x10] sm:$0xff]  ;;  %v2499_v20 = vld [vmem:[%s2671_s1 + $0x8] sm:$0xff] }
 0xa38   :  { %v693_v22 = vsel %vm692_vm12, 1.0, %v1959_v50 }
 0xa39   :  { %1677 = vmatmul.msk.f32.vlgmr.msrb.gmra.mxu1 %vm53_vm0, %v693_v22 }
 0xa3a   :  { %1705 = vmatpush.xpose.msk.msrb.mxu1 %vm53_vm0, %v2076_v16 }
 0xa3e   :  { %1706 = vmatpush.xpose.msk.msrb.mxu1 %vm53_vm0, %v2094_v19 }
 0xa42   :  { %1707 = vmatpush.xpose.msk.msrb.mxu1 %vm53_vm0, %v2104_v21 }
 0xa46   :  { %1708 = vmatpush.xpose.msk.msrb.mxu1 %vm53_vm0, %v2116_v23 }
 0xab6   :  { %v714_v24 = vpop.f32.mrf.mxu1 }
 0xab7   :  { %v715_v25 = vadd.f32 %v714_v24, %v2190_v42 }
 0xab9   :  { %v717_v26 = vmul.f32 0.5, %v715_v25 }
 0xabb   :  { %1836 = vtanh.f32 %v717_v26 }
 0xac1   :  { %v1837_v27 = vpop.eup %1836 }
 0xac2   :  { %v719_v28 = vmul.f32 0.5, %v1837_v27 }
 0xac4   :  { %v720_v30 = vadd.f32 0.5, %v719_v28  ;;  %v1704_v28 = vld [vmem:[%s2681_s11 + $0x58] sm:$0x7f] }
 0xac6   :  { %vm723_vm13 = vcmp.gt.f32.partialorder %v720_v30, %v1678_v29 }
 0xac7   :  { %v724_v31 = vsel %vm723_vm13, 1.0, %v1959_v50 }
 0xac8   :  { %1679 = vmatmul.msk.f32.vlgmr.msra.gmra.mxu3 %vm77_vm2, %v724_v31 }
 0xac9   :  { %988 = vmatpush.msra.mxu3 %v2076_v16 }
 0xacb   :  { %989 = vmatpush.msra.mxu3 %v2094_v19 }
 0xacd   :  { %990 = vmatpush.msra.mxu3 %v2104_v21 }
 0xacf   :  { %991 = vmatpush.msra.mxu3 %v2116_v23 }
 0xb4b   :  { %v745_v32 = vpop.f32.mrf.mxu3 }
 0xb4c   :  { %v746_v33 = vadd.f32 %v745_v32, %v2214_v60 }
 0xb4e   :  { %v748_v34 = vmul.f32 0.5, %v746_v33 }
 0xb50   :  { %1838 = vtanh.f32 %v748_v34 }
 0xb56   :  { %v1839_v35 = vpop.eup %1838 }
 0xb57   :  { %v750_v36 = vmul.f32 0.5, %v1839_v35 }
 0xb59   :  { %v751_v38 = vadd.f32 0.5, %v750_v36  ;;  %v1710_v36 = vld [vmem:[%s2680_s10 + $0x60] sm:$0x7f] }
 0xb5b   :  { %vm754_vm14 = vcmp.gt.f32.partialorder %v751_v38, %v1680_v37 }
 0xb5c   :  { %v755_v39 = vsel %vm754_vm14, 1.0, %v1959_v50 }
 0xb5d   :  { %1685 = vmatmul.msk.f32.vlgmr.msrb.gmra.mxu0 %vm53_vm0, %v755_v39 }
 0xb5e   :  { %1713 = vmatpush.xpose.msk.msrb.mxu0 %vm53_vm0, %v2076_v16 }
 0xb62   :  { %1714 = vmatpush.xpose.msk.msrb.mxu0 %vm53_vm0, %v2094_v19 }
 0xb66   :  { %1715 = vmatpush.xpose.msk.msrb.mxu0 %vm53_vm0, %v2104_v21 }
 0xb6a   :  { %1716 = vmatpush.xpose.msk.msrb.mxu0 %vm53_vm0, %v2116_v23 }
 0xbda   :  { %v776_v40 = vpop.f32.mrf.mxu0 }
 0xbdb   :  { %v777_v41 = vadd.f32 %v776_v40, %v2190_v42 }
 0xbdd   :  { %v779_v43 = vmul.f32 0.5, %v777_v41 }
 0xbdf   :  { %1840 = vtanh.f32 %v779_v43 }
 0xbe5   :  { %v1841_v44 = vpop.eup %1840 }
 0xbe6   :  { %v781_v45 = vmul.f32 0.5, %v1841_v44 }
 0xbe8   :  { %v782_v47 = vadd.f32 0.5, %v781_v45  ;;  %v1712_v45 = vld [vmem:[%s2681_s11 + $0x60] sm:$0x7f] }
 0xbea   :  { %vm785_vm15 = vcmp.gt.f32.partialorder %v782_v47, %v1686_v46 }
 0xbeb   :  { %v786_v48 = vsel %vm785_vm15, 1.0, %v1959_v50 }
 0xbec   :  { %1687 = vmatmul.msk.f32.vlgmr.msra.gmra.mxu2 %vm77_vm2, %v786_v48 }
 0xbed   :  { %1050 = vmatpush.msra.mxu2 %v2076_v16 }
 0xbef   :  { %1051 = vmatpush.msra.mxu2 %v2094_v19 }
 0xbf1   :  { %1052 = vmatpush.msra.mxu2 %v2104_v21 }
 0xbf3   :  { %1053 = vmatpush.msra.mxu2 %v2116_v23 }
 0xc6f   :  { %v807_v49 = vpop.f32.mrf.mxu2 }
 0xc70   :  { %v808_v51 = vadd.f32 %v807_v49, %v2214_v60 }
 0xc72   :  { %v810_v52 = vmul.f32 0.5, %v808_v51 }
 0xc74   :  { %1842 = vtanh.f32 %v810_v52 }
 0xc7a   :  { %v1843_v53 = vpop.eup %1842 }
 0xc7b   :  { %v812_v54 = vmul.f32 0.5, %v1843_v53 }
 0xc7d   :  { %v813_v56 = vadd.f32 0.5, %v812_v54  ;;  %v1718_v54 = vld [vmem:[%s2680_s10 + $0x68] sm:$0x7f] }
 0xc7f   :  { %vm816_vm1 = vcmp.gt.f32.partialorder %v813_v56, %v1688_v55 }
 0xc80   :  { %v817_v57 = vsel %vm816_vm1, 1.0, %v1959_v50 }
 0xc81   :  { %1693 = vmatmul.msk.f32.vlgmr.msrb.gmra.mxu3 %vm53_vm0, %v817_v57 }
 0xc82   :  { %1721 = vmatpush.xpose.msk.msrb.mxu3 %vm53_vm0, %v2076_v16 }
 0xc86   :  { %1722 = vmatpush.xpose.msk.msrb.mxu3 %vm53_vm0, %v2094_v19 }
 0xc8a   :  { %1723 = vmatpush.xpose.msk.msrb.mxu3 %vm53_vm0, %v2104_v21 }
 0xc8e   :  { %1724 = vmatpush.xpose.msk.msrb.mxu3 %vm53_vm0, %v2116_v23 }
 0xd04   :  { %v838_v58 = vpop.f32.mrf.mxu3 }
 0xd05   :  { %v839_v59 = vadd.f32 %v838_v58, %v2190_v42 }
 0xd07   :  { %v841_v61 = vmul.f32 0.5, %v839_v59 }
 0xd09   :  { %1844 = vtanh.f32 %v841_v61 }
 0xd0f   :  { %v1845_v62 = vpop.eup %1844 }
 0xd10   :  { %v843_v63 = vmul.f32 0.5, %v1845_v62 }
 0xd12   :  { %v844_v1 = vadd.f32 0.5, %v843_v63  ;;  %v1720_v63 = vld [vmem:[%s2681_s11 + $0x68] sm:$0x7f] }
 0xd14   :  { %vm847_vm3 = vcmp.gt.f32.partialorder %v844_v1, %v1694_v0 }
 0xd15   :  { %v848_v2 = vsel %vm847_vm3, 1.0, %v1959_v50 }
 0xd16   :  { %1695 = vmatmul.msk.f32.vlgmr.msra.gmra.mxu1 %vm77_vm2, %v848_v2 }
 0xd17   :  { %1112 = vmatpush.msra.mxu1 %v2076_v16 }
 0xd19   :  { %1113 = vmatpush.msra.mxu1 %v2094_v19 }
 0xd1b   :  { %1114 = vmatpush.msra.mxu1 %v2104_v21 }
 0xd1d   :  { %1115 = vmatpush.msra.mxu1 %v2116_v23 }
 0xd93   :  { %v869_v3 = vpop.f32.mrf.mxu1 }
 0xd94   :  { %v870_v4 = vadd.f32 %v869_v3, %v2214_v60 }
 0xd96   :  { %v872_v5 = vmul.f32 0.5, %v870_v4 }
 0xd98   :  { %1846 = vtanh.f32 %v872_v5 }
 0xd9e   :  { %v1847_v6 = vpop.eup %1846 }
 0xd9f   :  { %v874_v7 = vmul.f32 0.5, %v1847_v6 }
 0xda1   :  { %v875_v9 = vadd.f32 0.5, %v874_v7  ;;  %v1726_v7 = vld [vmem:[%s2680_s10 + $0x70] sm:$0x7f] }
 0xda3   :  { %vm878_vm5 = vcmp.gt.f32.partialorder %v875_v9, %v1696_v8 }
 0xda4   :  { %v879_v10 = vsel %vm878_vm5, 1.0, %v1959_v50 }
 0xda5   :  { %1701 = vmatmul.msk.f32.vlgmr.msrb.gmra.mxu2 %vm53_vm0, %v879_v10 }
 0xda6   :  { %1729 = vmatpush.xpose.msk.msrb.mxu2 %vm53_vm0, %v2076_v16  ;;  %v1702_v16 = vld [vmem:[%s2680_s10 + $0x58] sm:$0x7f] }
 0xdaa   :  { %1730 = vmatpush.xpose.msk.msrb.mxu2 %vm53_vm0, %v2094_v19 }
 0xdae   :  { %1731 = vmatpush.xpose.msk.msrb.mxu2 %vm53_vm0, %v2104_v21  ;;  %v2487_v21 = vld [vmem:[%s2671_s1 + $0x18] sm:$0xff] }
 0xdb2   :  { %1732 = vmatpush.xpose.msk.msrb.mxu2 %vm53_vm0, %v2116_v23 }
 0xe28   :  { %v900_v11 = vpop.f32.mrf.mxu2 }
 0xe29   :  { %v901_v12 = vadd.f32 %v900_v11, %v2190_v42 }
 0xe2b   :  { %v903_v13 = vmul.f32 0.5, %v901_v12 }
 0xe2d   :  { %1848 = vtanh.f32 %v903_v13 }
 0xe33   :  { %v1849_v14 = vpop.eup %1848 }
 0xe34   :  { %v905_v15 = vmul.f32 0.5, %v1849_v14 }
 0xe36   :  { %v906_v17 = vadd.f32 0.5, %v905_v15  ;;  %v1728_v15 = vld [vmem:[%s2681_s11 + $0x70] sm:$0x7f] }
 0xe38   :  { %vm909_vm6 = vcmp.gt.f32.partialorder %v906_v17, %v1702_v16 }
 0xe39   :  { %v910_v19 = vsel %vm909_vm6, 1.0, %v1959_v50 }
 0xe3a   :  { %1703 = vmatmul.msk.f32.vlgmr.msra.gmra.mxu0 %vm77_vm2, %v910_v19 }
 0xe3b   :  { %1174 = vmatpush.msra.mxu0 %v2487_v21 }
 0xe3d   :  { %1175 = vmatpush.msra.mxu0 %v2493_v18 }
 0xe3f   :  { %1176 = vmatpush.msra.mxu0 %v2499_v20 }
 0xe41   :  { %1177 = vmatpush.msra.mxu0 %v2116_v23  ;;  %v2518_v23 = vld [vmem:[%s2671_s1] sm:$0xff] }
 0xeb7   :  { %v931_v22 = vpop.f32.mrf.mxu0 }
 0xeb8   :  { %v932_v24 = vadd.f32 %v931_v22, %v2214_v60 }
 0xeba   :  { %v934_v25 = vmul.f32 0.5, %v932_v24 }
 0xebc   :  { %1850 = vtanh.f32 %v934_v25 }
 0xec2   :  { %v1851_v26 = vpop.eup %1850 }
 0xec3   :  { %v936_v27 = vmul.f32 0.5, %v1851_v26 }
 0xec5   :  { %v937_v29 = vadd.f32 0.5, %v936_v27  ;;  %v1734_v27 = vld [vmem:[%s2680_s10 + $0x78] sm:$0x7f] }
 0xec7   :  { %vm940_vm7 = vcmp.gt.f32.partialorder %v937_v29, %v1704_v28 }
 0xec8   :  { %v941_v30 = vsel %vm940_vm7, 1.0, %v1959_v50 }
 0xec9   :  { %1709 = vmatmul.msk.f32.vlgmr.msrb.gmra.mxu1 %vm53_vm0, %v941_v30 }
 0xeca   :  { %1737 = vmatpush.xpose.msk.msrb.mxu1 %vm53_vm0, %v2487_v21 }
 0xece   :  { %1738 = vmatpush.xpose.msk.msrb.mxu1 %vm53_vm0, %v2493_v18 }
 0xed2   :  { %1739 = vmatpush.xpose.msk.msrb.mxu1 %vm53_vm0, %v2499_v20 }
 0xed6   :  { %1740 = vmatpush.xpose.msk.msrb.mxu1 %vm53_vm0, %v2518_v23 }
 0xf46   :  { %v962_v31 = vpop.f32.mrf.mxu1 }
 0xf47   :  { %v963_v32 = vadd.f32 %v962_v31, %v2190_v42 }
 0xf49   :  { %v965_v33 = vmul.f32 0.5, %v963_v32 }
 0xf4b   :  { %1852 = vtanh.f32 %v965_v33 }
 0xf51   :  { %v1853_v34 = vpop.eup %1852 }
 0xf52   :  { %v967_v35 = vmul.f32 0.5, %v1853_v34 }
 0xf54   :  { %v968_v37 = vadd.f32 0.5, %v967_v35  ;;  %v1736_v35 = vld [vmem:[%s2681_s11 + $0x78] sm:$0x7f] }
 0xf56   :  { %vm971_vm8 = vcmp.gt.f32.partialorder %v968_v37, %v1710_v36 }
 0xf57   :  { %v972_v38 = vsel %vm971_vm8, 1.0, %v1959_v50 }
 0xf58   :  { %1711 = vmatmul.msk.f32.vlgmr.msra.gmra.mxu3 %vm77_vm2, %v972_v38 }
 0xf59   :  { %1236 = vmatpush.msra.mxu3 %v2487_v21 }
 0xf5b   :  { %1237 = vmatpush.msra.mxu3 %v2493_v18 }
 0xf5d   :  { %1238 = vmatpush.msra.mxu3 %v2499_v20 }
 0xf5f   :  { %1239 = vmatpush.msra.mxu3 %v2518_v23 }
 0xfdb   :  { %v993_v39 = vpop.f32.mrf.mxu3 }
 0xfdc   :  { %v994_v40 = vadd.f32 %v993_v39, %v2214_v60  ;;  %v1742_v39 = vld [vmem:[%s2680_s10 + $0x80] sm:$0x7f] }
 0xfde   :  { %v996_v41 = vmul.f32 0.5, %v994_v40 }
 0xfe0   :  { %1854 = vtanh.f32 %v996_v41 }
 0xfe6   :  { %v1855_v43 = vpop.eup %1854 }
 0xfe7   :  { %v998_v44 = vmul.f32 0.5, %v1855_v43 }
 0xfe9   :  { %v999_v46 = vadd.f32 0.5, %v998_v44 }
 0xfeb   :  { %vm1002_vm9 = vcmp.gt.f32.partialorder %v999_v46, %v1712_v45 }
 0xfec   :  { %v1003_v47 = vsel %vm1002_vm9, 1.0, %v1959_v50 }
 0xfed   :  { %1717 = vmatmul.msk.f32.vlgmr.msrb.gmra.mxu0 %vm53_vm0, %v1003_v47 }
 0xfee   :  { %1745 = vmatpush.xpose.msk.msrb.mxu0 %vm53_vm0, %v2487_v21 }
 0xff2   :  { %1746 = vmatpush.xpose.msk.msrb.mxu0 %vm53_vm0, %v2493_v18 }
 0xff6   :  { %1747 = vmatpush.xpose.msk.msrb.mxu0 %vm53_vm0, %v2499_v20 }
 0xffa   :  { %1748 = vmatpush.xpose.msk.msrb.mxu0 %vm53_vm0, %v2518_v23 }
0x106a   :  { %v1024_v48 = vpop.f32.mrf.mxu0 }
0x106b   :  { %v1025_v49 = vadd.f32 %v1024_v48, %v2190_v42  ;;  %v1744_v48 = vld [vmem:[%s2681_s11 + $0x80] sm:$0x7f] }
0x106d   :  { %v1027_v51 = vmul.f32 0.5, %v1025_v49 }
0x106f   :  { %1856 = vtanh.f32 %v1027_v51 }
0x1075   :  { %v1857_v52 = vpop.eup %1856 }
0x1076   :  { %v1029_v53 = vmul.f32 0.5, %v1857_v52 }
0x1078   :  { %v1030_v55 = vadd.f32 0.5, %v1029_v53 }
0x107a   :  { %vm1033_vm10 = vcmp.gt.f32.partialorder %v1030_v55, %v1718_v54 }
0x107b   :  { %v1034_v56 = vsel %vm1033_vm10, 1.0, %v1959_v50  ;;  %vm1559_vm10 = vcmask 6144  }
0x107c   :  { %1719 = vmatmul.msk.f32.vlgmr.msra.gmra.mxu2 %vm77_vm2, %v1034_v56 }
0x107d   :  { %1298 = vmatpush.msra.mxu2 %v2487_v21 }
0x107f   :  { %1299 = vmatpush.msra.mxu2 %v2493_v18 }
0x1081   :  { %1300 = vmatpush.msra.mxu2 %v2499_v20 }
0x1083   :  { %1301 = vmatpush.msra.mxu2 %v2518_v23 }
0x10ff   :  { %v1055_v57 = vpop.f32.mrf.mxu2 }
0x1100   :  { %v1056_v58 = vadd.f32 %v1055_v57, %v2214_v60  ;;  %v1750_v57 = vld [vmem:[%s2680_s10 + $0x88] sm:$0x7f] }
0x1102   :  { %v1058_v59 = vmul.f32 0.5, %v1056_v58 }
0x1104   :  { %1858 = vtanh.f32 %v1058_v59 }
0x110a   :  { %v1859_v61 = vpop.eup %1858 }
0x110b   :  { %v1060_v62 = vmul.f32 0.5, %v1859_v61 }
0x110d   :  { %v1061_v0 = vadd.f32 0.5, %v1060_v62 }
0x110f   :  { %vm1064_vm11 = vcmp.gt.f32.partialorder %v1061_v0, %v1720_v63 }
0x1110   :  { %v1065_v1 = vsel %vm1064_vm11, 1.0, %v1959_v50 }
0x1111   :  { %1725 = vmatmul.msk.f32.vlgmr.msrb.gmra.mxu3 %vm53_vm0, %v1065_v1 }
0x1112   :  { %1753 = vmatpush.xpose.msk.msrb.mxu3 %vm53_vm0, %v2487_v21 }
0x1116   :  { %1754 = vmatpush.xpose.msk.msrb.mxu3 %vm53_vm0, %v2493_v18 }
0x111a   :  { %1755 = vmatpush.xpose.msk.msrb.mxu3 %vm53_vm0, %v2499_v20 }
0x111e   :  { %1756 = vmatpush.xpose.msk.msrb.mxu3 %vm53_vm0, %v2518_v23 }
0x1194   :  { %v1086_v2 = vpop.f32.mrf.mxu3 }
0x1195   :  { %v1087_v3 = vadd.f32 %v1086_v2, %v2190_v42  ;;  %v1752_v2 = vld [vmem:[%s2681_s11 + $0x88] sm:$0x7f] }
0x1197   :  { %v1089_v4 = vmul.f32 0.5, %v1087_v3 }
0x1199   :  { %1860 = vtanh.f32 %v1089_v4 }
0x119f   :  { %v1861_v5 = vpop.eup %1860 }
0x11a0   :  { %v1091_v6 = vmul.f32 0.5, %v1861_v5 }
0x11a2   :  { %v1092_v8 = vadd.f32 0.5, %v1091_v6 }
0x11a4   :  { %vm1095_vm12 = vcmp.gt.f32.partialorder %v1092_v8, %v1726_v7 }
0x11a5   :  { %v1096_v9 = vsel %vm1095_vm12, 1.0, %v1959_v50 }
0x11a6   :  { %1727 = vmatmul.msk.f32.vlgmr.msra.gmra.mxu1 %vm77_vm2, %v1096_v9 }
0x11a7   :  { %1360 = vmatpush.msra.mxu1 %v2487_v21 }
0x11a9   :  { %1361 = vmatpush.msra.mxu1 %v2493_v18 }
0x11ab   :  { %1362 = vmatpush.msra.mxu1 %v2499_v20 }
0x11ad   :  { %1363 = vmatpush.msra.mxu1 %v2518_v23 }
0x1223   :  { %v1117_v10 = vpop.f32.mrf.mxu1 }
0x1224   :  { %v1118_v11 = vadd.f32 %v1117_v10, %v2214_v60  ;;  %v1758_v10 = vld [vmem:[%s2680_s10 + $0x90] sm:$0x7f] }
0x1226   :  { %v1120_v12 = vmul.f32 0.5, %v1118_v11 }
0x1228   :  { %1862 = vtanh.f32 %v1120_v12 }
0x122e   :  { %v1863_v13 = vpop.eup %1862 }
0x122f   :  { %v1122_v14 = vmul.f32 0.5, %v1863_v13 }
0x1231   :  { %v1123_v16 = vadd.f32 0.5, %v1122_v14 }
0x1233   :  { %vm1126_vm13 = vcmp.gt.f32.partialorder %v1123_v16, %v1728_v15 }
0x1234   :  { %v1127_v17 = vsel %vm1126_vm13, 1.0, %v1959_v50 }
0x1235   :  { %1733 = vmatmul.msk.f32.vlgmr.msrb.gmra.mxu2 %vm53_vm0, %v1127_v17 }
0x1236   :  { %1761 = vmatpush.xpose.msk.msrb.mxu2 %vm53_vm0, %v2487_v21 }
0x123a   :  { %1762 = vmatpush.xpose.msk.msrb.mxu2 %vm53_vm0, %v2493_v18 }
0x123e   :  { %1763 = vmatpush.xpose.msk.msrb.mxu2 %vm53_vm0, %v2499_v20 }
0x1242   :  { %1764 = vmatpush.xpose.msk.msrb.mxu2 %vm53_vm0, %v2518_v23 }
0x12b8   :  { %v1148_v19 = vpop.f32.mrf.mxu2 }
0x12b9   :  { %v1149_v22 = vadd.f32 %v1148_v19, %v2190_v42  ;;  %v1760_v19 = vld [vmem:[%s2681_s11 + $0x90] sm:$0x7f] }
0x12bb   :  { %v1151_v24 = vmul.f32 0.5, %v1149_v22 }
0x12bd   :  { %1864 = vtanh.f32 %v1151_v24 }
0x12c3   :  { %v1865_v25 = vpop.eup %1864 }
0x12c4   :  { %v1153_v26 = vmul.f32 0.5, %v1865_v25 }
0x12c6   :  { %v1154_v28 = vadd.f32 0.5, %v1153_v26 }
0x12c8   :  { %vm1157_vm14 = vcmp.gt.f32.partialorder %v1154_v28, %v1734_v27 }
0x12c9   :  { %v1158_v29 = vsel %vm1157_vm14, 1.0, %v1959_v50 }
0x12ca   :  { %1735 = vmatmul.msk.f32.vlgmr.msra.gmra.mxu0 %vm77_vm2, %v1158_v29 }
0x12cb   :  { %1422 = vmatpush.msra.mxu0 %v2487_v21 }
0x12cd   :  { %1423 = vmatpush.msra.mxu0 %v2493_v18 }
0x12cf   :  { %1424 = vmatpush.msra.mxu0 %v2499_v20 }
0x12d1   :  { %1425 = vmatpush.msra.mxu0 %v2518_v23 }
0x1347   :  { %v1179_v30 = vpop.f32.mrf.mxu0 }
0x1348   :  { %v1180_v31 = vadd.f32 %v1179_v30, %v2214_v60  ;;  %v1766_v30 = vld [vmem:[%s2680_s10 + $0x98] sm:$0x7f] }
0x134a   :  { %v1182_v32 = vmul.f32 0.5, %v1180_v31 }
0x134c   :  { %1866 = vtanh.f32 %v1182_v32 }
0x1352   :  { %v1867_v33 = vpop.eup %1866 }
0x1353   :  { %v1184_v34 = vmul.f32 0.5, %v1867_v33 }
0x1355   :  { %v1185_v36 = vadd.f32 0.5, %v1184_v34 }
0x1357   :  { %vm1188_vm15 = vcmp.gt.f32.partialorder %v1185_v36, %v1736_v35 }
0x1358   :  { %v1189_v21 = vsel %vm1188_vm15, 1.0, %v1959_v50 }
0x1359   :  { %1741 = vmatmul.msk.f32.vlgmr.msrb.gmra.mxu1 %vm53_vm0, %v1189_v21  ;;  %v1768_v21 = vld [vmem:[%s2681_s11 + $0x98] sm:$0x7f] }
0x13d6   :  { %v1210_v18 = vpop.f32.mrf.mxu1 }
0x13d7   :  { %v1211_v20 = vadd.f32 %v1210_v18, %v2190_v42 }
0x13d9   :  { %v1213_v23 = vmul.f32 0.5, %v1211_v20  ;;  %v1890_v20 = vld [vmem:[%s2670_s0 + $0x1] sm:$0x7f] }
0x13db   :  { %1868 = vtanh.f32 %v1213_v23 }
0x13e1   :  { %v1869_v37 = vpop.eup %1868 }
0x13e2   :  { %v1215_v38 = vmul.f32 0.5, %v1869_v37 }
0x13e4   :  { %v1216_v40 = vadd.f32 0.5, %v1215_v38 }
0x13e6   :  { %vm1219_vm1 = vcmp.gt.f32.partialorder %v1216_v40, %v1742_v39  ;;  %v1962_v39 = vmov 16.0  }
0x13e7   :  { %v1220_v41 = vsel %vm1219_vm1, 1.0, %v1959_v50 }
0x13e8   :  { %1743 = vmatmul.msk.f32.vlgmr.msra.gmra.mxu3 %vm77_vm2, %v1220_v41 }
0x146b   :  { %v1241_v43 = vpop.f32.mrf.mxu3 }
0x146c   :  { %v1242_v44 = vadd.f32 %v1241_v43, %v2214_v60 }
0x146e   :  { %v1244_v45 = vmul.f32 0.5, %v1242_v44 }
0x1470   :  { %1870 = vtanh.f32 %v1244_v45 }
0x1476   :  { %v1871_v46 = vpop.eup %1870 }
0x1477   :  { %v1246_v47 = vmul.f32 0.5, %v1871_v46 }
0x1479   :  { %v1247_v49 = vadd.f32 0.5, %v1246_v47 }
0x147b   :  { %vm1250_vm3 = vcmp.gt.f32.partialorder %v1247_v49, %v1744_v48 }
0x147c   :  { %v1251_v51 = vsel %vm1250_vm3, 1.0, %v1959_v50 }
0x147d   :  { %1749 = vmatmul.msk.f32.vlgmr.msrb.gmra.mxu0 %vm53_vm0, %v1251_v51 }
0x14fa   :  { %v1272_v52 = vpop.f32.mrf.mxu0 }
0x14fb   :  { %v1273_v53 = vadd.f32 %v1272_v52, %v2190_v42 }
0x14fd   :  { %v1275_v54 = vmul.f32 0.5, %v1273_v53 }
0x14ff   :  { %1872 = vtanh.f32 %v1275_v54 }
0x1505   :  { %v1873_v55 = vpop.eup %1872 }
0x1506   :  { %v1277_v56 = vmul.f32 0.5, %v1873_v55 }
0x1508   :  { %v1278_v58 = vadd.f32 0.5, %v1277_v56 }
0x150a   :  { %vm1281_vm5 = vcmp.gt.f32.partialorder %v1278_v58, %v1750_v57 }
0x150b   :  { %v1282_v59 = vsel %vm1281_vm5, 1.0, %v1959_v50 }
0x150c   :  { %1751 = vmatmul.msk.f32.vlgmr.msra.gmra.mxu2 %vm77_vm2, %v1282_v59 }
0x158f   :  { %v1303_v61 = vpop.f32.mrf.mxu2 }
0x1590   :  { %v1304_v62 = vadd.f32 %v1303_v61, %v2214_v60 }
0x1592   :  { %v1306_v63 = vmul.f32 0.5, %v1304_v62 }
0x1594   :  { %1874 = vtanh.f32 %v1306_v63 }
0x159a   :  { %v1875_v0 = vpop.eup %1874 }
0x159b   :  { %v1308_v1 = vmul.f32 0.5, %v1875_v0 }
0x159d   :  { %v1309_v3 = vadd.f32 0.5, %v1308_v1 }
0x159f   :  { %vm1312_vm6 = vcmp.gt.f32.partialorder %v1309_v3, %v1752_v2 }
0x15a0   :  { %v1313_v4 = vsel %vm1312_vm6, 1.0, %v1959_v50 }
0x15a1   :  { %1757 = vmatmul.msk.f32.vlgmr.msrb.gmra.mxu3 %vm53_vm0, %v1313_v4 }
0x1624   :  { %v1334_v5 = vpop.f32.mrf.mxu3 }
0x1625   :  { %v1335_v6 = vadd.f32 %v1334_v5, %v2190_v42 }
0x1627   :  { %v1337_v7 = vmul.f32 0.5, %v1335_v6 }
0x1629   :  { %1876 = vtanh.f32 %v1337_v7 }
0x162f   :  { %v1877_v8 = vpop.eup %1876 }
0x1630   :  { %v1339_v9 = vmul.f32 0.5, %v1877_v8 }
0x1632   :  { %v1340_v11 = vadd.f32 0.5, %v1339_v9 }
0x1634   :  { %vm1343_vm7 = vcmp.gt.f32.partialorder %v1340_v11, %v1758_v10 }
0x1635   :  { %v1344_v12 = vsel %vm1343_vm7, 1.0, %v1959_v50 }
0x1636   :  { %1759 = vmatmul.msk.f32.vlgmr.msra.gmra.mxu1 %vm77_vm2, %v1344_v12 }
0x16b3   :  { %v1365_v13 = vpop.f32.mrf.mxu1 }
0x16b4   :  { %v1366_v14 = vadd.f32 %v1365_v13, %v2214_v60 }
0x16b6   :  { %v1368_v15 = vmul.f32 0.5, %v1366_v14 }
0x16b8   :  { %1878 = vtanh.f32 %v1368_v15 }
0x16be   :  { %v1879_v16 = vpop.eup %1878 }
0x16bf   :  { %v1370_v17 = vmul.f32 0.5, %v1879_v16 }
0x16c1   :  { %v1371_v22 = vadd.f32 0.5, %v1370_v17 }
0x16c3   :  { %vm1374_vm8 = vcmp.gt.f32.partialorder %v1371_v22, %v1760_v19 }
0x16c4   :  { %v1375_v24 = vsel %vm1374_vm8, 1.0, %v1959_v50 }
0x16c5   :  { %1765 = vmatmul.msk.f32.vlgmr.msrb.gmra.mxu2 %vm53_vm0, %v1375_v24 }
0x1748   :  { %v1396_v25 = vpop.f32.mrf.mxu2 }
0x1749   :  { %v1397_v26 = vadd.f32 %v1396_v25, %v2190_v42 }
0x174b   :  { %v1399_v27 = vmul.f32 0.5, %v1397_v26 }
0x174d   :  { %1880 = vtanh.f32 %v1399_v27 }
0x1753   :  { %v1881_v28 = vpop.eup %1880 }
0x1754   :  { %v1401_v29 = vmul.f32 0.5, %v1881_v28 }
0x1756   :  { %v1402_v31 = vadd.f32 0.5, %v1401_v29 }
0x1758   :  { %vm1405_vm9 = vcmp.gt.f32.partialorder %v1402_v31, %v1766_v30 }
0x1759   :  { %v1406_v32 = vsel %vm1405_vm9, 1.0, %v1959_v50 }
0x175a   :  { %1767 = vmatmul.msk.f32.vlgmr.msra.gmra.mxu0 %vm77_vm2, %v1406_v32 }
0x17d7   :  { %v1427_v33 = vpop.f32.mrf.mxu0 }
0x17d8   :  { %v1428_v34 = vadd.f32 %v1427_v33, %v2214_v60 }
0x17da   :  { %v1430_v35 = vmul.f32 0.5, %v1428_v34 }
0x17dc   :  { %1882 = vtanh.f32 %v1430_v35 }
0x17dd   :  { %1884 = vrcp.f32 %v1962_v39 }
0x17e2   :  { %v1883_v42 = vpop.eup %1882 }
0x17e3   :  { %v1432_v36 = vmul.f32 0.5, %v1883_v42  ;;  %v1885_v40 = vpop.eup %1884 }
0x17e4   :  { %v1552_v41 = vmul.f32 16.0, %v1885_v40  ;;  %vm1556_vm2 = vweird.f32 %v1885_v40 }
0x17e5   :  { %v1433_v18 = vadd.f32 0.5, %v1432_v36 }
0x17e6   :  { %v1553_v43 = vsub.f32 1.0, %v1552_v41 }
0x17e7   :  { %vm1436_vm0 = vcmp.gt.f32.partialorder %v1433_v18, %v1768_v21 }
0x17e8   :  { %v1437_v60 = vsel %vm1436_vm0, 1.0, %v1959_v50  ;;  %v1554_v44 = vmul.f32 %v1885_v40, %v1553_v43 }
0x17e9   :  { %v1546_v23 = vsub.f32 %v1890_v20, %v1437_v60 }
0x17ea   :  { %v1555_v45 = vadd.f32 %v1885_v40, %v1554_v44 }
0x17eb   :  { %v1547_v37 = vand.u32 2147483647, %v1546_v23 }
0x17ec   :  { %v1557_v46 = vsel %vm1556_vm2, %v1885_v40, %v1555_v45 }
0x17ed   :  { %v1548_v38 = vsel %vm1453_vm4, %v1547_v37, 0.0 }
0x17ee   :  { %1549 = vadd.xlane.f32.xlu0 %v1548_v38 }
0x1861   :  { %v1550_v50 = vpop.xlane.xlu0 %1549 }
0x1862   :  { %v1558_v47 = vmul.f32 %v1557_v46, %v1550_v50 }
0x1864   :  { %1560 = vst.msk [vmem:[%s2683_s13] sm:$0x7f] %vm1559_vm10, %v1558_v47 }
0x1865   :  { %1947 = dma.done.wait [#allocation5], 16  }
0x1866   :  { %1948 = vsyncadd [#allocation5], 4294967280 }
0x1867   :  { %1949 = dma.done.wait [#allocation7], 16  }
0x1868   :  { %1950 = vsyncadd [#allocation7], 4294967280 }
0x1869   :  { %1595 = vsyncpa [#allocation5], 1 }
0x186a   :  { %1596 = vsyncpa [#allocation7], 1 }

</bundles_post_ra>
